<compile_context>
chip_gen: v7x
topology: tpu7x:2x2x1
jax: 0.10.0
libtpu: 0.0.40
codegen_flags: <defaults>
</compile_context>

<pallas_src>
import functools

import jax
import jax.numpy as jnp
from jax.experimental import pallas as pl
from jax.experimental.pallas import tpu as pltpu

LANE = 128  # lane width / per-action padded block size


def _round_up(n, m):
    return ((n + m - 1) // m) * m


def network_kernel(x_ref, w1_ref, b1_ref, w2_ref, b2_ref, w3_ref, b3_ref,
                   s_ref, q_ref, *, out_dim):
    x = x_ref[...]

    # MLP trunk: MXU matmuls, f32 accumulation; bias add / ReLU in f32.
    h1 = jnp.dot(x, w1_ref[...], preferred_element_type=jnp.float32) + b1_ref[...]
    h1 = jnp.maximum(h1, 0.0).astype(w2_ref.dtype)
    h2 = jnp.dot(h1, w2_ref[...], preferred_element_type=jnp.float32) + b2_ref[...]
    h2 = jnp.maximum(h2, 0.0).astype(w3_ref.dtype)
    logits = jnp.dot(h2, w3_ref[...], preferred_element_type=jnp.float32) + b3_ref[...]
    # logits: (TILE_B, out_dim*128); pad lanes carry a -1e9 bias -> exp == 0.

    # Per-action softmax over 128-lane-aligned blocks (aligned slices = free views).
    blocks = []
    for a in range(out_dim):
        s = logits[:, a * LANE:(a + 1) * LANE]
        m = jnp.max(s, axis=-1, keepdims=True)
        e = jnp.exp(s - m)
        inv = pl.reciprocal(jnp.sum(e, axis=-1, keepdims=True), approx=True)
        blocks.append(jnp.maximum(e * inv, 0.001))          # .clamp(min=0.001)
    dist = jnp.concatenate(blocks, axis=1)                   # (TILE_B, out_dim*128)

    # Expectation vs support folded into one MXU matmul with the block-diagonal
    # padded-support matrix (pad rows = 0, so clamped pad lanes contribute 0).
    # Output block is lane-dense (TILE_B, 128); real q lives in lanes [0, out_dim).
    q_ref[...] = jnp.dot(dist, s_ref[...], preferred_element_type=jnp.float32)


def network_forward(x, w1, b1, w2, b2, w3, b3, support, *, out_dim, atom_size,
                    compute_dtype=jnp.float32, tile_b=128):
    batch, in_dim = x.shape
    hidden = w1.shape[1]

    # ---- host-side parameter prep: pad the C51 head to 128-lane blocks ------
    w3_blk = jnp.zeros((hidden, out_dim, LANE), jnp.float32)
    w3_blk = w3_blk.at[:, :, :atom_size].set(w3.reshape(hidden, out_dim, atom_size))
    w3_pad = w3_blk.reshape(hidden, out_dim * LANE)

    b3_blk = jnp.full((1, out_dim, LANE), -1e9, jnp.float32)
    b3_blk = b3_blk.at[:, :, :atom_size].set(b3.reshape(1, out_dim, atom_size))
    b3_pad = b3_blk.reshape(1, out_dim * LANE)

    # Block-diagonal padded-support matrix: column `a` holds the support values
    # in rows [a*128, a*128 + atom_size); pad rows and pad columns are zero.
    sup = support.reshape(atom_size).astype(jnp.float32)
    s_mat = jnp.zeros((out_dim * LANE, LANE), jnp.float32)
    for a in range(out_dim):
        s_mat = s_mat.at[a * LANE:a * LANE + atom_size, a].set(sup)

    # ---- dtypes: trunk matmul operands in compute_dtype, rest in f32 --------
    xc = x.astype(compute_dtype)
    w1c = w1.astype(compute_dtype)
    w2c = w2.astype(compute_dtype)
    w3c = w3_pad.astype(compute_dtype)
    b1c = b1.astype(jnp.float32)
    b2c = b2.astype(jnp.float32)

    # ---- batch tiling --------------------------------------------------------
    tile_b = _round_up(max(8, min(tile_b, _round_up(batch, 8))), 8)
    batch_pad = _round_up(batch, tile_b)
    if batch_pad != batch:
        xc = jnp.pad(xc, ((0, batch_pad - batch), (0, 0)))

    const = lambda i: (0, 0)
    kernel = functools.partial(network_kernel, out_dim=out_dim)
    out = pl.pallas_call(
        kernel,
        out_shape=jax.ShapeDtypeStruct((batch_pad, LANE), jnp.float32),
        grid=(batch_pad // tile_b,),
        in_specs=[
            pl.BlockSpec((tile_b, in_dim), lambda i: (i, 0)),     # x   (tiled)
            pl.BlockSpec((in_dim, hidden), const),                # w1  (resident)
            pl.BlockSpec((1, hidden), const),                     # b1
            pl.BlockSpec((hidden, hidden), const),                # w2
            pl.BlockSpec((1, hidden), const),                     # b2
            pl.BlockSpec((hidden, out_dim * LANE), const),        # w3 (padded)
            pl.BlockSpec((1, out_dim * LANE), const),             # b3 (padded)
            pl.BlockSpec((out_dim * LANE, LANE), const),          # support matrix
        ],
        out_specs=pl.BlockSpec((tile_b, LANE), lambda i: (i, 0)),
        compiler_params=pltpu.CompilerParams(
            dimension_semantics=("parallel",)),
    )(xc, w1c, b1c, w2c, b2c, w3c, b3_pad, s_mat)

    return out[:batch, :out_dim]


def network_reference(x, w1, b1, w2, b2, w3, b3, support, *, out_dim, atom_size):
    """Pure-JAX reference mirroring the PyTorch forward."""
    h1 = jax.nn.relu(x @ w1 + b1)
    h2 = jax.nn.relu(h1 @ w2 + b2)
    q_atoms = (h2 @ w3 + b3).reshape(-1, out_dim, atom_size)
    dist = jax.nn.softmax(q_atoms, axis=-1)
    dist = jnp.maximum(dist, 0.001)                      # .clamp(min=0.001)
    return jnp.sum(dist * support.reshape(1, 1, atom_size), axis=2)


if __name__ == "__main__":
    BATCH = 256
    IN_DIM = 32
    OUT_DIM = 4
    ATOM_SIZE = 51
    HIDDEN = 128
    TILE_B = 128

    key = jax.random.PRNGKey(0)
    keys = jax.random.split(key, 7)

    def uinit(k, shape, fan_in):
        bound = 1.0 / jnp.sqrt(fan_in)
        return jax.random.uniform(k, shape, jnp.float32, -bound, bound)

    # PyTorch-style uniform +-1/sqrt(fan_in) parameter init.
    w1 = uinit(keys[0], (IN_DIM, HIDDEN), IN_DIM)
    b1 = uinit(keys[1], (1, HIDDEN), IN_DIM)
    w2 = uinit(keys[2], (HIDDEN, HIDDEN), HIDDEN)
    b2 = uinit(keys[3], (1, HIDDEN), HIDDEN)
    w3 = uinit(keys[4], (HIDDEN, OUT_DIM * ATOM_SIZE), HIDDEN)
    b3 = uinit(keys[5], (1, OUT_DIM * ATOM_SIZE), HIDDEN)

    # C51 support: linspace(v_min, v_max, atom_size)
    support = jnp.linspace(-10.0, 10.0, ATOM_SIZE, dtype=jnp.float32).reshape(1, ATOM_SIZE)
    x = jax.random.normal(keys[6], (BATCH, IN_DIM), jnp.float32)

    q_ref = network_reference(x, w1, b1, w2, b2, w3, b3, support,
                              out_dim=OUT_DIM, atom_size=ATOM_SIZE)

    # f32 trunk (strict check; only approx-reciprocal deviation expected).
    q = network_forward(x, w1, b1, w2, b2, w3, b3, support,
                        out_dim=OUT_DIM, atom_size=ATOM_SIZE,
                        compute_dtype=jnp.float32, tile_b=TILE_B)
    q = jax.block_until_ready(q)
    assert q.shape == (BATCH, OUT_DIM)
    assert jnp.allclose(q, q_ref, atol=1e-2, rtol=1e-2), "f32 mismatch vs reference"

    # bf16 trunk matmuls (v6e/v7x fast path, f32 accumulation) — loose sanity check.
    q_bf16 = network_forward(x, w1, b1, w2, b2, w3, b3, support,
                             out_dim=OUT_DIM, atom_size=ATOM_SIZE,
                             compute_dtype=jnp.bfloat16, tile_b=TILE_B)
    q_bf16 = jax.block_until_ready(q_bf16)
    assert bool(jnp.all(jnp.isfinite(q_bf16)))
    assert float(jnp.max(jnp.abs(q_bf16 - q_ref))) < 0.5, "bf16 path diverged"

    print("KERNEL_OK")
</pallas_src>

<mosaic_0001>
module attributes {stable_mosaic.version = 11 : i64} {
  func.func @network_kernel(%arg0: i32, %arg1: memref<128x32xf32, #tpu.memory_space<vmem>>, %arg2: memref<32x128xf32, #tpu.memory_space<vmem>>, %arg3: memref<1x128xf32, #tpu.memory_space<vmem>>, %arg4: memref<128x128xf32, #tpu.memory_space<vmem>>, %arg5: memref<1x128xf32, #tpu.memory_space<vmem>>, %arg6: memref<128x512xf32, #tpu.memory_space<vmem>>, %arg7: memref<1x512xf32, #tpu.memory_space<vmem>>, %arg8: memref<512x128xf32, #tpu.memory_space<vmem>>, %arg9: memref<128x128xf32, #tpu.memory_space<vmem>>) attributes {dimension_semantics = [#tpu.dimension_semantics<parallel>], iteration_bounds = array<i64: 2>, scalar_prefetch = 0 : i64, scratch_operands = 0 : i64, tpu.core_type = #tpu.core_type<tc>, window_params = [{transform_indices = @transform_0, window_bounds = array<i64: 128, 32>}, {pipeline_mode = #tpu.pipeline_mode<synchronous>, transform_indices = @transform_1, window_bounds = array<i64: 32, 128>}, {pipeline_mode = #tpu.pipeline_mode<synchronous>, transform_indices = @transform_2, window_bounds = array<i64: 1, 128>}, {pipeline_mode = #tpu.pipeline_mode<synchronous>, transform_indices = @transform_3, window_bounds = array<i64: 128, 128>}, {pipeline_mode = #tpu.pipeline_mode<synchronous>, transform_indices = @transform_4, window_bounds = array<i64: 1, 128>}, {pipeline_mode = #tpu.pipeline_mode<synchronous>, transform_indices = @transform_5, window_bounds = array<i64: 128, 512>}, {pipeline_mode = #tpu.pipeline_mode<synchronous>, transform_indices = @transform_6, window_bounds = array<i64: 1, 512>}, {pipeline_mode = #tpu.pipeline_mode<synchronous>, transform_indices = @transform_7, window_bounds = array<i64: 512, 128>}, {transform_indices = @transform_8, window_bounds = array<i64: 128, 128>}]} {
    %c0 = arith.constant 0 : index
    %c0_0 = arith.constant 0 : index
    %0 = vector.load %arg1[%c0, %c0_0] : memref<128x32xf32, #tpu.memory_space<vmem>>, vector<128x32xf32>
    %c0_1 = arith.constant 0 : index
    %c0_2 = arith.constant 0 : index
    %1 = vector.load %arg2[%c0_1, %c0_2] : memref<32x128xf32, #tpu.memory_space<vmem>>, vector<32x128xf32>
    %cst = arith.constant dense<0.000000e+00> : vector<128x128xf32>
    %2 = tpu.matmul %0, %1, %cst {dimension_numbers = #tpu.dot_dimension_numbers<[1], [0], [0], [1], [0, 0, 1, 1], [], []>} : vector<128x32xf32>, vector<32x128xf32>, vector<128x128xf32> -> vector<128x128xf32>
    %c0_3 = arith.constant 0 : index
    %c0_4 = arith.constant 0 : index
    %3 = vector.load %arg3[%c0_3, %c0_4] : memref<1x128xf32, #tpu.memory_space<vmem>>, vector<1x128xf32>
    %4 = vector.broadcast %3 : vector<1x128xf32> to vector<128x128xf32>
    %5 = arith.addf %2, %4 : vector<128x128xf32>
    %cst_5 = arith.constant 0.000000e+00 : f32
    %6 = vector.broadcast %cst_5 : f32 to vector<128x128xf32>
    %7 = arith.maximumf %5, %6 : vector<128x128xf32>
    %c0_6 = arith.constant 0 : index
    %c0_7 = arith.constant 0 : index
    %8 = vector.load %arg4[%c0_6, %c0_7] : memref<128x128xf32, #tpu.memory_space<vmem>>, vector<128x128xf32>
    %cst_8 = arith.constant dense<0.000000e+00> : vector<128x128xf32>
    %9 = tpu.matmul %7, %8, %cst_8 {dimension_numbers = #tpu.dot_dimension_numbers<[1], [0], [0], [1], [0, 0, 1, 1], [], []>} : vector<128x128xf32>, vector<128x128xf32>, vector<128x128xf32> -> vector<128x128xf32>
    %c0_9 = arith.constant 0 : index
    %c0_10 = arith.constant 0 : index
    %10 = vector.load %arg5[%c0_9, %c0_10] : memref<1x128xf32, #tpu.memory_space<vmem>>, vector<1x128xf32>
    %11 = vector.broadcast %10 : vector<1x128xf32> to vector<128x128xf32>
    %12 = arith.addf %9, %11 : vector<128x128xf32>
    %cst_11 = arith.constant 0.000000e+00 : f32
    %13 = vector.broadcast %cst_11 : f32 to vector<128x128xf32>
    %14 = arith.maximumf %12, %13 : vector<128x128xf32>
    %c0_12 = arith.constant 0 : index
    %c0_13 = arith.constant 0 : index
    %15 = vector.load %arg6[%c0_12, %c0_13] : memref<128x512xf32, #tpu.memory_space<vmem>>, vector<128x512xf32>
    %cst_14 = arith.constant dense<0.000000e+00> : vector<128x512xf32>
    %16 = tpu.matmul %14, %15, %cst_14 {dimension_numbers = #tpu.dot_dimension_numbers<[1], [0], [0], [1], [0, 0, 1, 1], [], []>} : vector<128x128xf32>, vector<128x512xf32>, vector<128x512xf32> -> vector<128x512xf32>
    %c0_15 = arith.constant 0 : index
    %c0_16 = arith.constant 0 : index
    %17 = vector.load %arg7[%c0_15, %c0_16] : memref<1x512xf32, #tpu.memory_space<vmem>>, vector<1x512xf32>
    %18 = vector.broadcast %17 : vector<1x512xf32> to vector<128x512xf32>
    %19 = arith.addf %16, %18 : vector<128x512xf32>
    %20 = vector.extract_strided_slice %19 {offsets = [0, 0], sizes = [128, 128], strides = [1, 1]} : vector<128x512xf32> to vector<128x128xf32>
    %cst_17 = arith.constant dense<0xFF800000> : vector<128xf32>
    %21 = vector.multi_reduction <maximumf>, %20, %cst_17 [1] : vector<128x128xf32> to vector<128xf32>
    %22 = vector.shape_cast %21 : vector<128xf32> to vector<128x1xf32>
    %23 = vector.broadcast %22 : vector<128x1xf32> to vector<128x128xf32>
    %24 = arith.subf %20, %23 : vector<128x128xf32>
    %25 = math.exp %24 : vector<128x128xf32>
    %cst_18 = arith.constant dense<0.000000e+00> : vector<128xf32>
    %26 = vector.multi_reduction <add>, %25, %cst_18 [1] : vector<128x128xf32> to vector<128xf32>
    %27 = vector.shape_cast %26 : vector<128xf32> to vector<128x1xf32>
    %28 = tpu.reciprocal %27 {approx = true} : vector<128x1xf32> -> vector<128x1xf32>
    %29 = vector.broadcast %28 : vector<128x1xf32> to vector<128x128xf32>
    %30 = arith.mulf %25, %29 : vector<128x128xf32>
    %cst_19 = arith.constant 1.000000e-03 : f32
    %31 = vector.broadcast %cst_19 : f32 to vector<128x128xf32>
    %32 = arith.maximumf %30, %31 : vector<128x128xf32>
    %33 = vector.extract_strided_slice %19 {offsets = [0, 128], sizes = [128, 128], strides = [1, 1]} : vector<128x512xf32> to vector<128x128xf32>
    %cst_20 = arith.constant dense<0xFF800000> : vector<128xf32>
    %34 = vector.multi_reduction <maximumf>, %33, %cst_20 [1] : vector<128x128xf32> to vector<128xf32>
    %35 = vector.shape_cast %34 : vector<128xf32> to vector<128x1xf32>
    %36 = vector.broadcast %35 : vector<128x1xf32> to vector<128x128xf32>
    %37 = arith.subf %33, %36 : vector<128x128xf32>
    %38 = math.exp %37 : vector<128x128xf32>
    %cst_21 = arith.constant dense<0.000000e+00> : vector<128xf32>
    %39 = vector.multi_reduction <add>, %38, %cst_21 [1] : vector<128x128xf32> to vector<128xf32>
    %40 = vector.shape_cast %39 : vector<128xf32> to vector<128x1xf32>
    %41 = tpu.reciprocal %40 {approx = true} : vector<128x1xf32> -> vector<128x1xf32>
    %42 = vector.broadcast %41 : vector<128x1xf32> to vector<128x128xf32>
    %43 = arith.mulf %38, %42 : vector<128x128xf32>
    %cst_22 = arith.constant 1.000000e-03 : f32
    %44 = vector.broadcast %cst_22 : f32 to vector<128x128xf32>
    %45 = arith.maximumf %43, %44 : vector<128x128xf32>
    %46 = vector.extract_strided_slice %19 {offsets = [0, 256], sizes = [128, 128], strides = [1, 1]} : vector<128x512xf32> to vector<128x128xf32>
    %cst_23 = arith.constant dense<0xFF800000> : vector<128xf32>
    %47 = vector.multi_reduction <maximumf>, %46, %cst_23 [1] : vector<128x128xf32> to vector<128xf32>
    %48 = vector.shape_cast %47 : vector<128xf32> to vector<128x1xf32>
    %49 = vector.broadcast %48 : vector<128x1xf32> to vector<128x128xf32>
    %50 = arith.subf %46, %49 : vector<128x128xf32>
    %51 = math.exp %50 : vector<128x128xf32>
    %cst_24 = arith.constant dense<0.000000e+00> : vector<128xf32>
    %52 = vector.multi_reduction <add>, %51, %cst_24 [1] : vector<128x128xf32> to vector<128xf32>
    %53 = vector.shape_cast %52 : vector<128xf32> to vector<128x1xf32>
    %54 = tpu.reciprocal %53 {approx = true} : vector<128x1xf32> -> vector<128x1xf32>
    %55 = vector.broadcast %54 : vector<128x1xf32> to vector<128x128xf32>
    %56 = arith.mulf %51, %55 : vector<128x128xf32>
    %cst_25 = arith.constant 1.000000e-03 : f32
    %57 = vector.broadcast %cst_25 : f32 to vector<128x128xf32>
    %58 = arith.maximumf %56, %57 : vector<128x128xf32>
    %59 = vector.extract_strided_slice %19 {offsets = [0, 384], sizes = [128, 128], strides = [1, 1]} : vector<128x512xf32> to vector<128x128xf32>
    %cst_26 = arith.constant dense<0xFF800000> : vector<128xf32>
    %60 = vector.multi_reduction <maximumf>, %59, %cst_26 [1] : vector<128x128xf32> to vector<128xf32>
    %61 = vector.shape_cast %60 : vector<128xf32> to vector<128x1xf32>
    %62 = vector.broadcast %61 : vector<128x1xf32> to vector<128x128xf32>
    %63 = arith.subf %59, %62 : vector<128x128xf32>
    %64 = math.exp %63 : vector<128x128xf32>
    %cst_27 = arith.constant dense<0.000000e+00> : vector<128xf32>
    %65 = vector.multi_reduction <add>, %64, %cst_27 [1] : vector<128x128xf32> to vector<128xf32>
    %66 = vector.shape_cast %65 : vector<128xf32> to vector<128x1xf32>
    %67 = tpu.reciprocal %66 {approx = true} : vector<128x1xf32> -> vector<128x1xf32>
    %68 = vector.broadcast %67 : vector<128x1xf32> to vector<128x128xf32>
    %69 = arith.mulf %64, %68 : vector<128x128xf32>
    %cst_28 = arith.constant 1.000000e-03 : f32
    %70 = vector.broadcast %cst_28 : f32 to vector<128x128xf32>
    %71 = arith.maximumf %69, %70 : vector<128x128xf32>
    %72 = tpu.concatenate %32, %45, %58, %71 in 1 : vector<128x128xf32>, vector<128x128xf32>, vector<128x128xf32>, vector<128x128xf32> -> vector<128x512xf32>
    %c0_29 = arith.constant 0 : index
    %c0_30 = arith.constant 0 : index
    %73 = vector.load %arg8[%c0_29, %c0_30] : memref<512x128xf32, #tpu.memory_space<vmem>>, vector<512x128xf32>
    %cst_31 = arith.constant dense<0.000000e+00> : vector<128x128xf32>
    %74 = tpu.matmul %72, %73, %cst_31 {dimension_numbers = #tpu.dot_dimension_numbers<[1], [0], [0], [1], [0, 0, 1, 1], [], []>} : vector<128x512xf32>, vector<512x128xf32>, vector<128x128xf32> -> vector<128x128xf32>
    %c0_32 = arith.constant 0 : index
    %c0_33 = arith.constant 0 : index
    %75 = vector.load %arg9[%c0_32, %c0_33] : memref<128x128xf32, #tpu.memory_space<vmem>>, vector<128x128xf32>
    tpu.vector_store %arg9[%c0_32, %c0_33], %74 {strides = array<i32>} : memref<128x128xf32, #tpu.memory_space<vmem>>, vector<128x128xf32>,
    return
  }
  func.func @transform_0(%arg0: i32) -> (i32, i32) {
    %c0_i32 = arith.constant 0 : i32
    %c0_i32_0 = arith.constant 0 : i32
    return %arg0, %c0_i32 : i32, i32
  }
  func.func @transform_1(%arg0: i32) -> (i32, i32) {
    %c0_i32 = arith.constant 0 : i32
    %c0_i32_0 = arith.constant 0 : i32
    %c0_i32_1 = arith.constant 0 : i32
    return %c0_i32, %c0_i32_0 : i32, i32
  }
  func.func @transform_2(%arg0: i32) -> (i32, i32) {
    %c0_i32 = arith.constant 0 : i32
    %c0_i32_0 = arith.constant 0 : i32
    %c0_i32_1 = arith.constant 0 : i32
    return %c0_i32, %c0_i32_0 : i32, i32
  }
  func.func @transform_3(%arg0: i32) -> (i32, i32) {
    %c0_i32 = arith.constant 0 : i32
    %c0_i32_0 = arith.constant 0 : i32
    %c0_i32_1 = arith.constant 0 : i32
    return %c0_i32, %c0_i32_0 : i32, i32
  }
  func.func @transform_4(%arg0: i32) -> (i32, i32) {
    %c0_i32 = arith.constant 0 : i32
    %c0_i32_0 = arith.constant 0 : i32
    %c0_i32_1 = arith.constant 0 : i32
    return %c0_i32, %c0_i32_0 : i32, i32
  }
  func.func @transform_5(%arg0: i32) -> (i32, i32) {
    %c0_i32 = arith.constant 0 : i32
    %c0_i32_0 = arith.constant 0 : i32
    %c0_i32_1 = arith.constant 0 : i32
    return %c0_i32, %c0_i32_0 : i32, i32
  }
  func.func @transform_6(%arg0: i32) -> (i32, i32) {
    %c0_i32 = arith.constant 0 : i32
    %c0_i32_0 = arith.constant 0 : i32
    %c0_i32_1 = arith.constant 0 : i32
    return %c0_i32, %c0_i32_0 : i32, i32
  }
  func.func @transform_7(%arg0: i32) -> (i32, i32) {
    %c0_i32 = arith.constant 0 : i32
    %c0_i32_0 = arith.constant 0 : i32
    %c0_i32_1 = arith.constant 0 : i32
    return %c0_i32, %c0_i32_0 : i32, i32
  }
  func.func @transform_8(%arg0: i32) -> (i32, i32) {
    %c0_i32 = arith.constant 0 : i32
    %c0_i32_0 = arith.constant 0 : i32
    return %arg0, %c0_i32 : i32, i32
  }
}

</mosaic_0001>

<bundles_post_ra>
// kernel: tpu_custom_call.1
= control target key start
LH: loop header
LB: loop body
LE: loop exit
PB: predicated region body
PF: predicated region fallthrough
CT: control target
= control target key end

     0   :  { %13 = vsyncpa [#allocation3], 0  ;;  %s4375_s0 = inlined_call_operand.vmem [shape: f32[256,32], index: 0, kind: input, shape index: {}]   ;;  %s4376_s1 = inlined_call_operand.vmem [shape: f32[32,128], index: 1, kind: input, shape index: {}]   ;;  %s4377_s2 = inlined_call_operand.vmem [shape: f32[1,128], index: 2, kind: input, shape index: {}]   ;;  %s4378_s3 = inlined_call_operand.vmem [shape: f32[128,128], index: 3, kind: input, shape index: {}]   ;;  %s4379_s4 = inlined_call_operand.vmem [shape: f32[1,128], index: 4, kind: input, shape index: {}]   ;;  %s4380_s5 = inlined_call_operand.hbm [shape: f32[128,512], index: 5, kind: input, shape index: {}]   ;;  %s4381_s6 = inlined_call_operand.vmem [shape: f32[1,512], index: 6, kind: input, shape index: {}]   ;;  %s4382_s7 = inlined_call_operand.hbm [shape: f32[512,128], index: 7, kind: input, shape index: {}]   ;;  %s4383_s8 = inlined_call_operand.hbm [shape: f32[256,128], index: 8, kind: output, shape index: {}]  }
   0x1   :  { %14 = vsyncpa [#allocation6], 0 }
   0x2   :  { %15 = vsyncpa [#allocation4], 0 }
   0x3   :  { %17 = vsyncpa [#allocation4 + $0x1], 0  ;;  %s3299_s27 = smov 0   ;;  %s3301_s28 = smov 0  }
   0x4   :  { %s3303_s29 = smov 0   ;;  %s3305_s30 = smov 0  }
   0x5 LB: > { %4434 = sst [smem:[#allocation11_spill]] %s3238_s29  ;;  %s3320_s9 = sadd.s32 4294967295, %s3242_s30   ;;  %s3242_s30 = sphi %s3305_s30, %s4543_s30   ;;  %s3238_s29 = sphi %s3303_s29, %s4540_s29   ;;  %s3234_s28 = sphi %s3301_s28, %s4542_s28   ;;  %s3230_s27 = sphi %s3299_s27, %s4541_s27  }
   0x6   : > { %s2274_s10 = sadd.s32 4294967294, %s3242_s30   ;;  %s3324_s11 = sadd.s32 1, %s3242_s30  }
   0x7   : > { %s203_s12 = sadd.s32 1, %s3238_s29  ;;  %s200_s13 = ssub.s32 %s3242_s30, %s3324_s11 }
   0x8   : > { %p213_p0 = scmp.ne.s32.totalorder %s3238_s29, %s3234_s28  ;;  %p201_p1 = scmp.eq.s32.totalorder %s200_s13, 0 }
   0x9   : > { %p214_p2 = scmp.eq.s32.totalorder %s3320_s9, 1  ;;  %p219_p3 = scmp.ne.s32.totalorder %s3234_s28, %s3230_s27 }
   0xa   : > { %p220_p4 = scmp.eq.s32.totalorder %s2274_s10, 1  ;;  %p2275_p7 = scmp.ge.s32.totalorder %s3242_s30, 1 }
   0xb   : > { %s3335_s14 = scalar_select %p201_p1, %s3238_s29, %s203_s12  }
   0xc   : > { %p3337_p5 = por %p214_p2, %p213_p0  ;;  %p3341_p6 = por %p220_p4, %p219_p3 }
   0xd   : > { %4435 = sst [smem:[#allocation12_spill]] %s3335_s14  ;;  %p227_p8 = scmp.lt.s32.totalorder %s3242_s30, 3 }
   0xe   : > { %s4436_s15 = scalar_select %p3337_p5, 1, 0 }
   0xf   : > { %s4437_s16 = scalar_select %p3341_p6, 1, 0 }
  0x10   : > { %p4384_p9 = scmp.eq.s32.totalorder %s3320_s9, 0  ;;  %p3348_p10 = pnand %p2275_p7, %p227_p8 }
  0x11   : > { %s3244_s18 = smov [#allocation2]   ;;  %s3245_s21 = smov [#allocation5]  }
  0x12   : > { %s4438_s17 = scalar_select %p3348_p10, 1, 0 }
  0x13   : > { %s251_s19 = sshll.u32 %s3244_s18, 4  ;;  %p2803_p11 = pneg %p3348_p10  ;;  %s252_s19 = int_to_ptr.vmem [resolvable:$true] %s251_s19 }
  0x14   : > { %s267_s22 = sshll.u32 %s3245_s21, 4  ;;  %s3116_s25 = scalar_lea.hbm %s4380_s5, 8192  ;;  %s3360_s22 = int_to_ptr.vmem [resolvable:$true] %s267_s22 }
  0x15   : > { %p3356_p12 = pnand %p4384_p9, %p2803_p11  ;;  %p3117_p13 = scmp.ne.s32.totalorder %s4380_s5, %s3116_s25 }
  0x16   : > { %p3123_p3 = scmp.lt.u32.totalorder %s3116_s25, %s4380_s5 }
  0x17   : > { %p3118_p0 = pneg %p3356_p12 }
  0x19   : > { %p3119_p1 = pnand %p3118_p0, %p3117_p13 }
  0x1b   : > { %p3120_p2 = pneg %p3119_p1 }
  0x1d   : > { %p3125_p4 = pnand %p3123_p3, %p3120_p2 }
  0x1f   : > { %3128 = shalt.err (!%p3125_p4)
}
  0x20   : > { %s3129_s18 = scalar_lea.vmem %s252_s19, 8192  ;;  %p3137_p9 = scmp.lt.s32.totalorder %s252_s19, %s252_s19 }
  0x21   : > { %p3130_p7 = scmp.ne.s32.totalorder %s252_s19, %s3129_s18  ;;  %p3138_p6 = scmp.lt.s32.totalorder %s3129_s18, %s3129_s18 }
  0x23   : > { %p3132_p8 = pnand %p3130_p7, %p3118_p0  ;;  %p3139_p5 = por %p3138_p6, %p3137_p9 }
  0x25   : > { %p3133_p11 = pneg %p3132_p8 }
  0x27   : > { %p3140_p10 = pnand %p3139_p5, %p3133_p11 }
  0x29   : > { %3143 = shalt.err (!%p3140_p10)
}
  0x2a   : > { %s3246_s21 = smov 512   ;;  %s3247_s23 = smov 32  }
  0x2b   : > { %2806 = dma.hbm_to_vmem [thread:$0]  (!%p3356_p12), %s4380_s5, 8192, %s252_s19, [#allocation3], %s3246_s21, %s3246_s21, %s3247_s23  }
  0x2c   : > { %s3144_s12 = scalar_lea.hbm %s4382_s7, 8192 }
  0x2d   : > { %p3145_p13 = scmp.ne.s32.totalorder %s4382_s7, %s3144_s12  ;;  %p3151_p9 = scmp.lt.u32.totalorder %s3144_s12, %s4382_s7 }
  0x2f   : > { %p3147_p5 = pnand %p3145_p13, %p3118_p0 }
  0x31   : > { %p3148_p6 = pneg %p3147_p5 }
  0x33   : > { %p3153_p10 = pnand %p3151_p9, %p3148_p6 }
  0x35   : > { %3156 = shalt.err (!%p3153_p10)
}
  0x36   : > { %s3157_s19 = scalar_lea.vmem %s3360_s22, 8192  ;;  %p3165_p4 = scmp.lt.s32.totalorder %s3360_s22, %s3360_s22 }
  0x37   : > { %p3158_p1 = scmp.ne.s32.totalorder %s3360_s22, %s3157_s19  ;;  %p3166_p7 = scmp.lt.s32.totalorder %s3157_s19, %s3157_s19 }
  0x39   : > { %p3160_p2 = pnand %p3158_p1, %p3118_p0  ;;  %p3167_p8 = por %p3166_p7, %p3165_p4 }
  0x3b   : > { %p3161_p3 = pneg %p3160_p2 }
  0x3d   : > { %p3168_p11 = pnand %p3167_p8, %p3161_p3 }
  0x3f   : > { %3171 = shalt.err (!%p3168_p11)
}
  0x40   : > { %s3248_s29 = smov 128   ;;  %s3249_s14 = smov 8  }
  0x41   : > { %2809 = dma.hbm_to_vmem [thread:$0]  (!%p3356_p12), %s4382_s7, 8192, %s3360_s22, [#allocation6], %s3248_s29, %s3248_s29, %s3249_s14  }
  0x42   : > { %p4440_p13 = scmp.ne.s32.totalorder %s4438_s17, 0 }
  0x44   : > { %292 = sbr.rel (%p4440_p13) target bundleno = 1428 (0x594), region = 52 }
  0x4b   : > { %p4441_p0 = scmp.eq.s32.totalorder %s3320_s9, 0 }
  0x4d   : > { %3217 = dma.done.wait (%p4441_p0), [#allocation3], 8192   ;;  %p4442_p5 = pmov %p4441_p0 }
  0x4e   : > { %p4443_p6 = pmov %p4441_p0 }
  0x4f   : > { %3219 = vsyncadd (%p4442_p5), [#allocation3], 4294959104 }
  0x50   : > { %3221 = dma.done.wait (%p4443_p6), [#allocation6], 8192   ;;  %p4444_p9 = pmov %p4441_p0 }
  0x51   : > { %s2283_s20 = sshll.u32 %s3320_s9, 4  ;;  %vm364_vm0 = vcmask 261120   ;;  %v353_v0 = vld [vmem:[%s4376_s1] sm:$0xff]  ;;  %v354_v1 = vld [vmem:[%s4376_s1 + $0x8] sm:$0xff]  ;;  %v355_v2 = vld [vmem:[%s4376_s1 + $0x10] sm:$0xff]  ;;  %s327_s13 = sand.u32 1, %s3234_s28  }
  0x52   : > { %3223 = vsyncadd (%p4444_p9), [#allocation6], 4294959104  ;;  %p331_p10 = scmp.lt.s32.totalorder %s2283_s20, 31  ;;  %v2609_v3 = vpack.c.bf16 %v354_v1, %v353_v0  ;;  %v356_v4 = vld [vmem:[%s4376_s1 + $0x18] sm:$0xff]  ;;  %v574_v7 = vld [vmem:[%s4378_s3] sm:$0xff]  ;;  %s2282_s18 = sshll.u32 %s327_s13, 7 }
  0x53   : > { %v2613_v6 = vpack.c.bf16 %v356_v4, %v355_v2  ;;  %v575_v8 = vld [vmem:[%s4378_s3 + $0x8] sm:$0xff]  ;;  %v576_v9 = vld [vmem:[%s4378_s3 + $0x10] sm:$0xff]  ;;  %v577_v10 = vld [vmem:[%s4378_s3 + $0x18] sm:$0xff]  ;;  %s4302_s19 = scalar_lea.vmem [#allocation7], %s2282_s18  ;;  %s2308_s29 = sshll.u32 %s3320_s9, 11 }
  0x54   : > { %s4545_s20 = smov (!%p331_p10, %s2283_s20), 31  ;;  %2610 = vmatprep.subr.bf16.mxu0 %v2609_v3  ;;  %v2617_v12 = vpack.c.bf16 %v575_v8, %v574_v7  ;;  %v2621_v13 = vpack.c.bf16 %v577_v10, %v576_v9  ;;  %v578_v15 = vld [vmem:[%s4378_s3 + $0x20] sm:$0xff]  ;;  %v579_v16 = vld [vmem:[%s4378_s3 + $0x28] sm:$0xff]  ;;  %v580_v20 = vld [vmem:[%s4378_s3 + $0x30] sm:$0xff]  ;;  %s2190_s14 = sshll.u32 %s4302_s19, 4  ;;  %s4328_s14 = int_to_ptr.vmem [resolvable:$true] %s2190_s14 }
  0x55   : > { %s2284_s22 = sshll.u32 %s4545_s20, 3  ;;  %2612 = vmatpush3.bf16.msra.mxu0 %v2609_v3  ;;  %v2625_v18 = vpack.c.bf16 %v579_v16, %v578_v15  ;;  %v581_v21 = vld [vmem:[%s4378_s3 + $0x38] sm:$0xff]  ;;  %v582_v25 = vld [vmem:[%s4378_s3 + $0x40] sm:$0xff]  ;;  %v583_v26 = vld [vmem:[%s4378_s3 + $0x48] sm:$0xff]  ;;  %s4326_s20 = scalar_lea.hbm %s4383_s8, %s2308_s29 }
  0x56   : > { %s3423_s25 = scalar_lea.vmem %s4375_s0, %s2284_s22  ;;  %2614 = vmatprep.subr.bf16.mxu0 %v2613_v6  ;;  %2618 = vmatprep.subr.bf16.mxu1 %v2617_v12  ;;  %v2629_v23 = vpack.c.bf16 %v581_v21, %v580_v20  ;;  %v2633_v28 = vpack.c.bf16 %v583_v26, %v582_v25  ;;  %v584_v30 = vld [vmem:[%s4378_s3 + $0x50] sm:$0xff]  ;;  %v585_v31 = vld [vmem:[%s4378_s3 + $0x58] sm:$0xff]  ;;  %v586_v35 = vld [vmem:[%s4378_s3 + $0x60] sm:$0xff]  ;;  %s4334_s22 = scalar_lea.sflag [#allocation4], %s327_s13 }
  0x57   : > { %v337_v5 = vld [vmem:[%s3423_s25] sm:$0xff]  ;;  %v338_v11 = vld [vmem:[%s3423_s25 + $0x8] sm:$0xff]  ;;  %v339_v14 = vld [vmem:[%s3423_s25 + $0x10] sm:$0xff]  ;;  %2620 = vmatpush3.bf16.msra.mxu1 %v2617_v12  ;;  %v2637_v33 = vpack.c.bf16 %v585_v31, %v584_v30  ;;  %s3172_s9 = scalar_lea.vmem %s4328_s14, 2048  ;;  %p4537_p1 = scmp.ne.s32.totalorder %s4436_s15, 0 }
  0x58   : > { %2529 = vmatprep.mubr.msk.f32.mxu0 %vm364_vm0, %v337_v5  ;;  %v340_v17 = vld [vmem:[%s3423_s25 + $0x18] sm:$0xff]  ;;  %2622 = vmatprep.subr.bf16.mxu1 %v2621_v13  ;;  %v341_v19 = vld [vmem:[%s3423_s25 + $0x20] sm:$0xff]  ;;  %v342_v22 = vld [vmem:[%s3423_s25 + $0x28] sm:$0xff]  ;;  %p3173_p12 = scmp.ne.s32.totalorder %s4328_s14, %s3172_s9 }
  0x59   : > { %2616 = vmatpush3.bf16.msra.mxu0 %v2613_v6  ;;  %v343_v24 = vld [vmem:[%s3423_s25 + $0x30] sm:$0xff]  ;;  %v344_v27 = vld [vmem:[%s3423_s25 + $0x38] sm:$0xff]  ;;  %v345_v29 = vld [vmem:[%s3423_s25 + $0x40] sm:$0xff] }
  0x5a   : > { %v346_v32 = vld [vmem:[%s3423_s25 + $0x48] sm:$0xff]  ;;  %v347_v34 = vld [vmem:[%s3423_s25 + $0x50] sm:$0xff]  ;;  %v348_v37 = vld [vmem:[%s3423_s25 + $0x58] sm:$0xff]  ;;  %p3174_p2 = pnand %p3173_p12, %p4537_p1 }
  0x5b   : > { %2624 = vmatpush3.bf16.msra.mxu1 %v2621_v13  ;;  %v587_v36 = vld [vmem:[%s4378_s3 + $0x68] sm:$0xff]  ;;  %v349_v39 = vld [vmem:[%s3423_s25 + $0x60] sm:$0xff]  ;;  %v351_v41 = vld [vmem:[%s3423_s25 + $0x70] sm:$0xff] }
  0x5c   : > { %2530 = vmatmul.mubr.msk.f32.vlgmr.msra.gmra.mrb[0].mxu0 %vm364_vm0, %v338_v11  ;;  %2626 = vmatprep.subr.bf16.mxu1 %v2625_v18  ;;  %v2641_v38 = vpack.c.bf16 %v587_v36, %v586_v35  ;;  %v350_v40 = vld [vmem:[%s3423_s25 + $0x68] sm:$0xff]  ;;  %v352_v42 = vld [vmem:[%s3423_s25 + $0x78] sm:$0xff]  ;;  %v588_v43 = vld [vmem:[%s4378_s3 + $0x70] sm:$0xff]  ;;  %p3175_p3 = pneg %p3174_p2  ;;  %s3251_s25 = smov [#allocation7]  }
  0x5d   : > { %2532 = vmatprep.mubr.msk.f32.mxu0 %vm364_vm0, %v339_v14  ;;  %v589_v44 = vld [vmem:[%s4378_s3 + $0x78] sm:$0xff]  ;;  %v759_v46 = vld [vmem:[#allocation2 + $0x8] sm:$0xff]  ;;  %v758_v48 = vld [vmem:[#allocation2] sm:$0xff]  ;;  %s3176_s24 = sshll.u32 %s3251_s25, 4  ;;  %s3177_s24 = int_to_ptr.vmem [resolvable:$false] %s3176_s24 }
  0x5e   : > { %v2645_v45 = vpack.c.bf16 %v589_v44, %v588_v43  ;;  %v763_v47 = vld [vmem:[#allocation2 + $0x28] sm:$0xff]  ;;  %v762_v50 = vld [vmem:[#allocation2 + $0x20] sm:$0xff]  ;;  %v761_v51 = vld [vmem:[#allocation2 + $0x18] sm:$0xff]  ;;  %s3178_s17 = scalar_lea.vmem %s3177_s24, 4096  ;;  %p3179_p4 = scmp.lt.s32.totalorder %s4328_s14, %s3177_s24 }
  0x5f   : > { %2628 = vmatpush3.bf16.msra.mxu1 %v2625_v18  ;;  %v2649_v49 = vpack.c.bf16 %v763_v47, %v759_v46  ;;  %v765_v52 = vld [vmem:[#allocation2 + $0x38] sm:$0xff]  ;;  %v2651_v53 = vpack.c.bf16 %v762_v50, %v758_v48  ;;  %v767_v55 = vld [vmem:[#allocation2 + $0x48] sm:$0xff]  ;;  %v766_v57 = vld [vmem:[#allocation2 + $0x40] sm:$0xff]  ;;  %p3180_p7 = scmp.lt.s32.totalorder %s3178_s17, %s3172_s9 }
  0x60   : > { %2533 = vmatmul.mubr.msk.f32.gmra.mrb[2].mxu0 %vm364_vm0, %v340_v17  ;;  %2630 = vmatprep.subr.bf16.mxu1 %v2629_v23  ;;  %v2681_v54 = vpack.c.bf16 %v765_v52, %v761_v51  ;;  %v771_v56 = vld [vmem:[#allocation2 + $0x68] sm:$0xff]  ;;  %v770_v58 = vld [vmem:[#allocation2 + $0x60] sm:$0xff]  ;;  %v760_v31 = vld [vmem:[#allocation2 + $0x10] sm:$0xff] }
  0x61   : > { %2535 = vmatprep.mubr.msk.f32.mxu0 %vm364_vm0, %v341_v19  ;;  %2650 = vmatprep.subr.bf16.mxu0 %v2649_v49  ;;  %v2653_v59 = vpack.c.bf16 %v771_v56, %v767_v55  ;;  %v2655_v60 = vpack.c.bf16 %v770_v58, %v766_v57  ;;  %v775_v61 = vld [vmem:[#allocation2 + $0x88] sm:$0xff]  ;;  %v774_v0 = vld [vmem:[#allocation2 + $0x80] sm:$0xff]  ;;  %v773_v35 = vld [vmem:[#allocation2 + $0x78] sm:$0xff]  ;;  %p3181_p8 = por %p3180_p7, %p3179_p4 }
  0x62   : > { %2652 = vmatpush1.bf16.msra.mxu0 %v2651_v53  ;;  %v779_v62 = vld [vmem:[#allocation2 + $0xa8] sm:$0xff]  ;;  %v778_v1 = vld [vmem:[#allocation2 + $0xa0] sm:$0xff]  ;;  %v768_v43 = vld [vmem:[#allocation2 + $0x50] sm:$0xff] }
  0x63   : > { %2632 = vmatpush3.bf16.msra.mxu1 %v2629_v23  ;;  %2654 = vmatprep.subr.bf16.mxu0 %v2653_v59  ;;  %v2657_v63 = vpack.c.bf16 %v779_v62, %v775_v61  ;;  %v2659_v2 = vpack.c.bf16 %v778_v1, %v774_v0  ;;  %v783_v3 = vld [vmem:[#allocation2 + $0xc8] sm:$0xff]  ;;  %v782_v6 = vld [vmem:[#allocation2 + $0xc0] sm:$0xff]  ;;  %v772_v44 = vld [vmem:[#allocation2 + $0x70] sm:$0xff]  ;;  %p3182_p11 = pnand %p3181_p8, %p3175_p3 }
  0x64   : > { %2536 = vmatmul.mubr.msk.f32.gmra.mrb[4].mxu0 %vm364_vm0, %v342_v22  ;;  %2634 = vmatprep.subr.bf16.mxu1 %v2633_v28  ;;  %v787_v4 = vld [vmem:[#allocation2 + $0xe8] sm:$0xff]  ;;  %v786_v7 = vld [vmem:[#allocation2 + $0xe0] sm:$0xff]  ;;  %v777_v46 = vld [vmem:[#allocation2 + $0x98] sm:$0xff]  ;;  %v2687_v51 = vpack.c.bf16 %v772_v44, %v768_v43 }
  0x65   : > { %2538 = vmatprep.mubr.msk.f32.mxu0 %vm364_vm0, %v343_v24  ;;  %v2661_v5 = vpack.c.bf16 %v787_v4, %v783_v3  ;;  %v791_v8 = vld [vmem:[#allocation2 + $0x108] sm:$0xff]  ;;  %v2663_v10 = vpack.c.bf16 %v786_v7, %v782_v6  ;;  %v790_v12 = vld [vmem:[#allocation2 + $0x100] sm:$0xff]  ;;  %v781_v47 = vld [vmem:[#allocation2 + $0xb8] sm:$0xff] }
  0x66   : > { %2656 = vmatpush1.bf16.msra.mxu0 %v2655_v60  ;;  %v795_v9 = vld [vmem:[#allocation2 + $0x128] sm:$0xff]  ;;  %v794_v13 = vld [vmem:[#allocation2 + $0x120] sm:$0xff]  ;;  %v776_v55 = vld [vmem:[#allocation2 + $0x90] sm:$0xff] }
  0x67   : > { %2636 = vmatpush3.bf16.msra.mxu1 %v2633_v28  ;;  %2658 = vmatprep.subr.bf16.mxu0 %v2657_v63  ;;  %v2665_v11 = vpack.c.bf16 %v795_v9, %v791_v8  ;;  %v799_v14 = vld [vmem:[#allocation2 + $0x148] sm:$0xff]  ;;  %v2667_v16 = vpack.c.bf16 %v794_v13, %v790_v12  ;;  %v798_v18 = vld [vmem:[#allocation2 + $0x140] sm:$0xff]  ;;  %v780_v56 = vld [vmem:[#allocation2 + $0xb0] sm:$0xff] }
  0x68   : > { %2539 = vmatmul.mubr.msk.f32.gmra.mrb[6].mxu0 %vm364_vm0, %v344_v27  ;;  %2638 = vmatprep.subr.bf16.mxu1 %v2637_v33  ;;  %v803_v15 = vld [vmem:[#allocation2 + $0x168] sm:$0xff]  ;;  %v802_v19 = vld [vmem:[#allocation2 + $0x160] sm:$0xff]  ;;  %v785_v58 = vld [vmem:[#allocation2 + $0xd8] sm:$0xff]  ;;  %v2691_v63 = vpack.c.bf16 %v780_v56, %v776_v55 }
  0x69   : > { %2541 = vmatprep.mubr.msk.f32.mxu0 %vm364_vm0, %v345_v29  ;;  %v2669_v17 = vpack.c.bf16 %v803_v15, %v799_v14  ;;  %v807_v20 = vld [vmem:[#allocation2 + $0x188] sm:$0xff]  ;;  %v2671_v22 = vpack.c.bf16 %v802_v19, %v798_v18  ;;  %v806_v24 = vld [vmem:[#allocation2 + $0x180] sm:$0xff]  ;;  %v789_v59 = vld [vmem:[#allocation2 + $0xf8] sm:$0xff] }
  0x6a   : > { %2660 = vmatpush1.bf16.msra.mxu0 %v2659_v2  ;;  %v811_v21 = vld [vmem:[#allocation2 + $0x1a8] sm:$0xff]  ;;  %v810_v25 = vld [vmem:[#allocation2 + $0x1a0] sm:$0xff]  ;;  %v2693_v2 = vpack.c.bf16 %v789_v59, %v785_v58  ;;  %v784_v3 = vld [vmem:[#allocation2 + $0xd0] sm:$0xff] }
  0x6b   : > { %2640 = vmatpush3.bf16.msra.mxu1 %v2637_v33  ;;  %2662 = vmatprep.subr.bf16.mxu0 %v2661_v5  ;;  %v2673_v23 = vpack.c.bf16 %v811_v21, %v807_v20  ;;  %v2675_v26 = vpack.c.bf16 %v810_v25, %v806_v24  ;;  %v3520_v27 = vld [vmem:[%s4377_s2] ss:$0 sm:$0xff]  ;;  %v788_v4 = vld [vmem:[#allocation2 + $0xf0] sm:$0xff]  ;;  %v793_v6 = vld [vmem:[#allocation2 + $0x118] sm:$0xff] }
  0x6c   : > { %2542 = vmatmul.mubr.msk.f32.gmra.mrb[8].mxu0 %vm364_vm0, %v346_v32  ;;  %2642 = vmatprep.subr.bf16.mxu1 %v2641_v38  ;;  %v764_v32 = vld [vmem:[#allocation2 + $0x30] sm:$0xff]  ;;  %v797_v7 = vld [vmem:[#allocation2 + $0x138] sm:$0xff]  ;;  %v814_v56 = vld [vmem:[#allocation2 + $0x1c0] sm:$0xff] }
  0x6d   : > { %2544 = vmatprep.mubr.msk.f32.mxu0 %vm364_vm0, %v347_v34  ;;  %v769_v34 = vld [vmem:[#allocation2 + $0x58] sm:$0xff]  ;;  %v2697_v14 = vpack.c.bf16 %v797_v7, %v793_v6  ;;  %v792_v15 = vld [vmem:[#allocation2 + $0x110] sm:$0xff] }
  0x6e   : > { %2664 = vmatpush1.bf16.msra.mxu0 %v2663_v10  ;;  %v801_v18 = vld [vmem:[#allocation2 + $0x158] sm:$0xff] }
  0x6f   : > { %2644 = vmatpush3.bf16.msra.mxu1 %v2641_v38  ;;  %2666 = vmatprep.subr.bf16.mxu0 %v2665_v11  ;;  %v2683_v38 = vpack.c.bf16 %v764_v32, %v760_v31  ;;  %v2695_v11 = vpack.c.bf16 %v788_v4, %v784_v3  ;;  %v805_v19 = vld [vmem:[#allocation2 + $0x178] sm:$0xff] }
  0x70   : > { %2545 = vmatmul.mubr.msk.f32.gmra.mrb[10].mxu0 %vm364_vm0, %v348_v37  ;;  %2646 = vmatprep.subr.bf16.mxu1 %v2645_v45  ;;  %v809_v31 = vld [vmem:[#allocation2 + $0x198] sm:$0xff] }
  0x71   : > { %2547 = vmatprep.mubr.msk.f32.mxu0 %vm364_vm0, %v349_v39  ;;  %v813_v32 = vld [vmem:[#allocation2 + $0x1b8] sm:$0xff] }
  0x72   : > { %2668 = vmatpush1.bf16.msra.mxu0 %v2667_v16  ;;  %v796_v16 = vld [vmem:[#allocation2 + $0x130] sm:$0xff]  ;;  %v821_v59 = vld [vmem:[#allocation2 + $0x1f8] sm:$0xff] }
  0x73   : > { %2648 = vmatpush3.bf16.msra.mxu1 %v2645_v45  ;;  %2670 = vmatprep.subr.bf16.mxu0 %v2669_v17 }
  0x74   : > { %2548 = vmatmul.mubr.msk.f32.gmra.mrb[12].mxu0 %vm364_vm0, %v350_v40  ;;  %2682 = vmatprep.subr.bf16.mxu1 %v2681_v54  ;;  %v2689_v54 = vpack.c.bf16 %v781_v47, %v777_v46 }
  0x75   : > { %2550 = vmatprep.mubr.msk.f32.mxu0 %vm364_vm0, %v351_v41 }
  0x76   : > { %2672 = vmatpush1.bf16.msra.mxu0 %v2671_v22 }
  0x77   : > { %2674 = vmatprep.subr.bf16.mxu0 %v2673_v23  ;;  %v2699_v23 = vpack.c.bf16 %v796_v16, %v792_v15 }
  0x78   : > { %2551 = vmatmul.mubr.msk.f32.gmra.mrb[14].mxu0 %vm364_vm0, %v352_v42  ;;  %v2685_v42 = vpack.c.bf16 %v773_v35, %v769_v34 }
  0x7a   : > { %2676 = vmatpush1.bf16.msra.mxu0 %v2675_v26  ;;  %v2701_v26 = vpack.c.bf16 %v805_v19, %v801_v18 }
 0x12f   : > { %v2531_v28 = vpop.f32.mrb[0].mxu0 }
 0x130   : > { %v485_v29 = vadd.f32 %v2531_v28, %v3520_v27  ;;  %v479_v30 = vpop.f32.mrb[1].mxu0  ;;  %v800_v28 = vld [vmem:[#allocation2 + $0x150] sm:$0xff] }
 0x131   : > { %v480_v33 = vadd.f32 %v3520_v27, %v479_v30 }
 0x132   : > { %v559_v39 = vmax.f32 %v485_v29, 0.0  ;;  %v804_v29 = vld [vmem:[#allocation2 + $0x170] sm:$0xff] }
 0x133   : > { %v558_v36 = vmax.f32 %v480_v33, 0.0  ;;  %v2534_v37 = vpop.f32.mrb[2].mxu0 }
 0x134   : > { %v495_v40 = vadd.f32 %v2534_v37, %v3520_v27  ;;  %v489_v41 = vpop.f32.mrb[3].mxu0 }
 0x135   : > { %2585 = vmatprep.mubr.f32.mxu1 %v558_v36  ;;  %v490_v45 = vadd.f32 %v3520_v27, %v489_v41  ;;  %v2703_v36 = vpack.c.bf16 %v804_v29, %v800_v28  ;;  %v812_v41 = vld [vmem:[#allocation2 + $0x1b0] sm:$0xff] }
 0x136   : > { %2586 = vmatmul.mubr.f32.vlgmr.msra.gmra.mrb[0].mxu1 %v559_v39  ;;  %v561_v48 = vmax.f32 %v495_v40, 0.0  ;;  %v2705_v39 = vpack.c.bf16 %v813_v32, %v809_v31  ;;  %v808_v40 = vld [vmem:[#allocation2 + $0x190] sm:$0xff] }
 0x137   : > { %v560_v49 = vmax.f32 %v490_v45, 0.0  ;;  %v2537_v50 = vpop.f32.mrb[4].mxu0  ;;  %2684 = vmatpush1.bf16.msra.mxu1 %v2683_v38  ;;  %v2707_v46 = vpack.c.bf16 %v812_v41, %v808_v40 }
 0x138   : > { %v505_v52 = vadd.f32 %v2537_v50, %v3520_v27  ;;  %v499_v53 = vpop.f32.mrb[5].mxu0  ;;  %2686 = vmatprep.subr.bf16.mxu1 %v2685_v42 }
 0x139   : > { %2588 = vmatprep.mubr.f32.mxu1 %v560_v49  ;;  %v500_v57 = vadd.f32 %v3520_v27, %v499_v53  ;;  %v819_v53 = vld [vmem:[#allocation2 + $0x1e8] sm:$0xff] }
 0x13a   : > { %2589 = vmatmul.mubr.f32.gmra.mrb[2].mxu1 %v561_v48  ;;  %v563_v60 = vmax.f32 %v505_v52, 0.0  ;;  %v815_v52 = vld [vmem:[#allocation2 + $0x1c8] sm:$0xff] }
 0x13b   : > { %v562_v61 = vmax.f32 %v500_v57, 0.0  ;;  %v2540_v62 = vpop.f32.mrb[6].mxu0  ;;  %2688 = vmatpush1.bf16.msra.mxu1 %v2687_v51  ;;  %v2677_v55 = vpack.c.bf16 %v819_v53, %v815_v52  ;;  %v818_v57 = vld [vmem:[#allocation2 + $0x1e0] sm:$0xff] }
 0x13c   : > { %v515_v0 = vadd.f32 %v2540_v62, %v3520_v27  ;;  %v509_v1 = vpop.f32.mrb[7].mxu0  ;;  %2690 = vmatprep.subr.bf16.mxu1 %v2689_v54  ;;  %v817_v54 = vld [vmem:[#allocation2 + $0x1d8] sm:$0xff]  ;;  %v2679_v58 = vpack.c.bf16 %v818_v57, %v814_v56  ;;  %v822_v53 = vld [vmem:[%s4381_s6] sm:$0xf] }
 0x13d   : > { %2591 = vmatprep.mubr.f32.mxu1 %v562_v61  ;;  %v510_v5 = vadd.f32 %v3520_v27, %v509_v1  ;;  %v820_v61 = vld [vmem:[#allocation2 + $0x1f0] sm:$0xff]  ;;  %2678 = vmatprep.subr.bf16.mxu0 %v2677_v55  ;;  %v2709_v62 = vpack.c.bf16 %v821_v59, %v817_v54 }
 0x13e   : > { %2592 = vmatmul.mubr.f32.gmra.mrb[4].mxu1 %v563_v60  ;;  %v565_v8 = vmax.f32 %v515_v0, 0.0  ;;  %v816_v60 = vld [vmem:[#allocation2 + $0x1d0] sm:$0xff]  ;;  %2680 = vmatpush1.bf16.msra.mxu0 %v2679_v58  ;;  %v3543_v0 = vld [vmem:[%s4379_s4] ss:$0 sm:$0xff] }
 0x13f   : > { %v564_v9 = vmax.f32 %v510_v5, 0.0  ;;  %v2543_v10 = vpop.f32.mrb[8].mxu0  ;;  %2692 = vmatpush1.bf16.msra.mxu1 %v2691_v63  ;;  %v2711_v63 = vpack.c.bf16 %v820_v61, %v816_v60 }
 0x140   : > { %v525_v12 = vadd.f32 %v2543_v10, %v3520_v27  ;;  %v519_v13 = vpop.f32.mrb[9].mxu0  ;;  %2694 = vmatprep.subr.bf16.mxu1 %v2693_v2 }
 0x141   : > { %2594 = vmatprep.mubr.f32.mxu1 %v564_v9  ;;  %v520_v17 = vadd.f32 %v3520_v27, %v519_v13 }
 0x142   : > { %2595 = vmatmul.mubr.f32.gmra.mrb[6].mxu1 %v565_v8  ;;  %v567_v20 = vmax.f32 %v525_v12, 0.0 }
 0x143   : > { %v566_v21 = vmax.f32 %v520_v17, 0.0  ;;  %v2546_v22 = vpop.f32.mrb[10].mxu0  ;;  %2696 = vmatpush1.bf16.msra.mxu1 %v2695_v11 }
 0x144   : > { %v535_v24 = vadd.f32 %v2546_v22, %v3520_v27  ;;  %v529_v25 = vpop.f32.mrb[11].mxu0  ;;  %2698 = vmatprep.subr.bf16.mxu1 %v2697_v14 }
 0x145   : > { %2597 = vmatprep.mubr.f32.mxu1 %v566_v21  ;;  %v530_v30 = vadd.f32 %v3520_v27, %v529_v25 }
 0x146   : > { %2598 = vmatmul.mubr.f32.gmra.mrb[8].mxu1 %v567_v20  ;;  %v569_v33 = vmax.f32 %v535_v24, 0.0 }
 0x147   : > { %v568_v34 = vmax.f32 %v530_v30, 0.0  ;;  %v2549_v35 = vpop.f32.mrb[12].mxu0  ;;  %2700 = vmatpush1.bf16.msra.mxu1 %v2699_v23 }
 0x148   : > { %v545_v37 = vadd.f32 %v2549_v35, %v3520_v27  ;;  %v539_v38 = vpop.f32.mrb[13].mxu0  ;;  %2702 = vmatprep.subr.bf16.mxu1 %v2701_v26 }
 0x149   : > { %2600 = vmatprep.mubr.f32.mxu1 %v568_v34  ;;  %v540_v42 = vadd.f32 %v3520_v27, %v539_v38 }
 0x14a   : > { %2601 = vmatmul.mubr.f32.gmra.mrb[10].mxu1 %v569_v33  ;;  %v571_v43 = vmax.f32 %v545_v37, 0.0 }
 0x14b   : > { %v570_v44 = vmax.f32 %v540_v42, 0.0  ;;  %v2552_v45 = vpop.f32.mrb[14].mxu0  ;;  %2704 = vmatpush1.bf16.msra.mxu1 %v2703_v36 }
 0x14c   : > { %v555_v47 = vadd.f32 %v2552_v45, %v3520_v27  ;;  %v549_v48 = vpop.f32.mrb[15].mxu0  ;;  %2706 = vmatprep.subr.bf16.mxu1 %v2705_v39 }
 0x14d   : > { %2603 = vmatprep.mubr.f32.mxu1 %v570_v44  ;;  %v550_v49 = vadd.f32 %v3520_v27, %v549_v48  ;;  %v3250_v27 = vmov 0.0  }
 0x14e   : > { %2604 = vmatmul.mubr.f32.gmra.mrb[12].mxu1 %v571_v43  ;;  %v573_v50 = vmax.f32 %v555_v47, 0.0  ;;  %908 = vmatprep.mubr.f32.mxu0 %v3250_v27 }
 0x14f   : > { %v572_v51 = vmax.f32 %v550_v49, 0.0  ;;  %2708 = vmatpush1.bf16.msra.mxu1 %v2707_v46 }
 0x150   : > { %2710 = vmatprep.subr.bf16.mxu1 %v2709_v62 }
 0x151   : > { %2606 = vmatprep.mubr.f32.mxu1 %v572_v51 }
 0x152   : > { %2607 = vmatmul.mubr.f32.gmra.mrb[14].mxu1 %v573_v50  ;;  %v824_v50 = vlaneseq }
 0x153   : > { %2712 = vmatpush1.bf16.msra.mxu1 %v2711_v63  ;;  %1069 = vmatprep.mubr.f32.mxu1 %v3250_v27 }
 0x154   : > { %v825_v51 = vshrl.u32 %v824_v50, 7 }
 0x156   : > { %v826_v52 = vsub.s32 0, %v825_v51  ;;  %v834_v55 = vsub.s32 2, %v825_v51  ;;  %v830_v60 = vsub.s32 1, %v825_v51 }
 0x158   : > { %v3594_v54 = vrot.slane %v822_v53, %v826_v52  ;;  %v3599_v59 = vrot.slane %v822_v53, %v834_v55 }
 0x209   : > { %v2587_v1 = vpop.f32.mrb[0].mxu1 }
 0x20a   : > { %v663_v2 = vpop.f32.mrb[1].mxu1  ;;  %v669_v4 = vadd.f32 %v2587_v1, %v3543_v0  ;;  %v3605_v1 = vrot.slane %v822_v53, %v830_v60 }
 0x20b   : > { %v664_v3 = vadd.f32 %v3543_v0, %v663_v2  ;;  %v838_v2 = vsub.s32 3, %v825_v51 }
 0x20c   : > { %v743_v9 = vmax.f32 %v669_v4, 0.0 }
 0x20d   : > { %v742_v5 = vmax.f32 %v664_v3, 0.0  ;;  %v2590_v6 = vpop.f32.mrb[2].mxu1 }
 0x20e   : > { %v673_v7 = vpop.f32.mrb[3].mxu1  ;;  %v679_v12 = vadd.f32 %v2590_v6, %v3543_v0 }
 0x20f   : > { %909 = vmatmul.mubr.f32.vlgmr.msra.gmra.mrb[16].mxu0 %v742_v5  ;;  %1070 = vmatmul.mubr.f32.vlgmr.msra.gmra.mrb[16].mxu1 %v742_v5  ;;  %v674_v8 = vadd.f32 %v3543_v0, %v673_v7 }
 0x210   : > { %914 = vmatprep.mubr.f32.mxu0 %v3250_v27  ;;  %1075 = vmatprep.mubr.f32.mxu1 %v3250_v27  ;;  %v745_v16 = vmax.f32 %v679_v12, 0.0 }
 0x211   : > { %v2593_v10 = vpop.f32.mrb[4].mxu1  ;;  %v744_v13 = vmax.f32 %v674_v8, 0.0 }
 0x212   : > { %v683_v11 = vpop.f32.mrb[5].mxu1  ;;  %v689_v20 = vadd.f32 %v2593_v10, %v3543_v0 }
 0x213   : > { %915 = vmatmul.mubr.f32.gmra.mrb[18].mxu0 %v743_v9  ;;  %1076 = vmatmul.mubr.f32.gmra.mrb[18].mxu1 %v743_v9  ;;  %v684_v17 = vadd.f32 %v3543_v0, %v683_v11  ;;  %v3615_v9 = vrot.slane %v822_v53, %v838_v2 }
 0x214   : > { %920 = vmatprep.mubr.f32.mxu0 %v3250_v27  ;;  %1081 = vmatprep.mubr.f32.mxu1 %v3250_v27  ;;  %v747_v24 = vmax.f32 %v689_v20, 0.0 }
 0x215   : > { %v2596_v14 = vpop.f32.mrb[6].mxu1  ;;  %v746_v21 = vmax.f32 %v684_v17, 0.0 }
 0x216   : > { %v693_v15 = vpop.f32.mrb[7].mxu1  ;;  %v699_v29 = vadd.f32 %v2596_v14, %v3543_v0 }
 0x217   : > { %921 = vmatmul.mubr.f32.gmra.mrb[20].mxu0 %v744_v13  ;;  %1082 = vmatmul.mubr.f32.gmra.mrb[20].mxu1 %v744_v13  ;;  %v694_v25 = vadd.f32 %v3543_v0, %v693_v15 }
 0x218   : > { %926 = vmatprep.mubr.f32.mxu0 %v3250_v27  ;;  %1087 = vmatprep.mubr.f32.mxu1 %v3250_v27  ;;  %v749_v33 = vmax.f32 %v699_v29, 0.0 }
 0x219   : > { %v2599_v18 = vpop.f32.mrb[8].mxu1  ;;  %v748_v30 = vmax.f32 %v694_v25, 0.0 }
 0x21a   : > { %v703_v19 = vpop.f32.mrb[9].mxu1  ;;  %v709_v35 = vadd.f32 %v2599_v18, %v3543_v0 }
 0x21b   : > { %927 = vmatmul.mubr.f32.gmra.mrb[22].mxu0 %v745_v16  ;;  %1088 = vmatmul.mubr.f32.gmra.mrb[22].mxu1 %v745_v16  ;;  %v704_v34 = vadd.f32 %v3543_v0, %v703_v19 }
 0x21c   : > { %932 = vmatprep.mubr.f32.mxu0 %v3250_v27  ;;  %1093 = vmatprep.mubr.f32.mxu1 %v3250_v27  ;;  %v751_v37 = vmax.f32 %v709_v35, 0.0 }
 0x21d   : > { %v2602_v22 = vpop.f32.mrb[10].mxu1  ;;  %v750_v36 = vmax.f32 %v704_v34, 0.0 }
 0x21e   : > { %v713_v23 = vpop.f32.mrb[11].mxu1  ;;  %v719_v39 = vadd.f32 %v2602_v22, %v3543_v0 }
 0x21f   : > { %933 = vmatmul.mubr.f32.gmra.mrb[24].mxu0 %v746_v21  ;;  %1094 = vmatmul.mubr.f32.gmra.mrb[24].mxu1 %v746_v21  ;;  %v714_v38 = vadd.f32 %v3543_v0, %v713_v23 }
 0x220   : > { %938 = vmatprep.mubr.f32.mxu0 %v3250_v27  ;;  %1099 = vmatprep.mubr.f32.mxu1 %v3250_v27  ;;  %v753_v41 = vmax.f32 %v719_v39, 0.0 }
 0x221   : > { %v2605_v26 = vpop.f32.mrb[12].mxu1  ;;  %v752_v40 = vmax.f32 %v714_v38, 0.0 }
 0x222   : > { %v723_v28 = vpop.f32.mrb[13].mxu1  ;;  %v729_v43 = vadd.f32 %v2605_v26, %v3543_v0 }
 0x223   : > { %939 = vmatmul.mubr.f32.gmra.mrb[26].mxu0 %v747_v24  ;;  %1100 = vmatmul.mubr.f32.gmra.mrb[26].mxu1 %v747_v24  ;;  %v724_v42 = vadd.f32 %v3543_v0, %v723_v28 }
 0x224   : > { %944 = vmatprep.mubr.f32.mxu0 %v3250_v27  ;;  %1105 = vmatprep.mubr.f32.mxu1 %v3250_v27  ;;  %v755_v45 = vmax.f32 %v729_v43, 0.0 }
 0x225   : > { %v2608_v31 = vpop.f32.mrb[14].mxu1  ;;  %v754_v44 = vmax.f32 %v724_v42, 0.0 }
 0x226   : > { %v733_v32 = vpop.f32.mrb[15].mxu1  ;;  %v739_v47 = vadd.f32 %v2608_v31, %v3543_v0 }
 0x227   : > { %945 = vmatmul.mubr.f32.gmra.mrb[28].mxu0 %v748_v30  ;;  %1106 = vmatmul.mubr.f32.gmra.mrb[28].mxu1 %v748_v30  ;;  %v734_v46 = vadd.f32 %v3543_v0, %v733_v32 }
 0x228   : > { %950 = vmatprep.mubr.f32.mxu0 %v3250_v27  ;;  %1111 = vmatprep.mubr.f32.mxu1 %v3250_v27  ;;  %v757_v49 = vmax.f32 %v739_v47, 0.0 }
 0x229   : > { %v756_v48 = vmax.f32 %v734_v46, 0.0 }
 0x22b   : > { %951 = vmatmul.mubr.f32.gmra.mrb[30].mxu0 %v749_v33  ;;  %1112 = vmatmul.mubr.f32.gmra.mrb[30].mxu1 %v749_v33 }
 0x22c   : > { %956 = vmatprep.mubr.f32.mxu0 %v3250_v27  ;;  %1117 = vmatprep.mubr.f32.mxu1 %v3250_v27 }
 0x22f   : > { %957 = vmatmul.mubr.f32.gmra.mrb[32].mxu0 %v750_v36  ;;  %1118 = vmatmul.mubr.f32.gmra.mrb[32].mxu1 %v750_v36 }
 0x230   : > { %962 = vmatprep.mubr.f32.mxu0 %v3250_v27  ;;  %1123 = vmatprep.mubr.f32.mxu1 %v3250_v27 }
 0x233   : > { %963 = vmatmul.mubr.f32.gmra.mrb[34].mxu0 %v751_v37  ;;  %1124 = vmatmul.mubr.f32.gmra.mrb[34].mxu1 %v751_v37 }
 0x234   : > { %968 = vmatprep.mubr.f32.mxu0 %v3250_v27  ;;  %1129 = vmatprep.mubr.f32.mxu1 %v3250_v27 }
 0x237   : > { %969 = vmatmul.mubr.f32.gmra.mrb[36].mxu0 %v752_v40  ;;  %1130 = vmatmul.mubr.f32.gmra.mrb[36].mxu1 %v752_v40 }
 0x238   : > { %974 = vmatprep.mubr.f32.mxu0 %v3250_v27  ;;  %1135 = vmatprep.mubr.f32.mxu1 %v3250_v27 }
 0x23b   : > { %975 = vmatmul.mubr.f32.gmra.mrb[38].mxu0 %v753_v41  ;;  %1136 = vmatmul.mubr.f32.gmra.mrb[38].mxu1 %v753_v41 }
 0x23c   : > { %980 = vmatprep.mubr.f32.mxu0 %v3250_v27  ;;  %1141 = vmatprep.mubr.f32.mxu1 %v3250_v27 }
 0x23f   : > { %981 = vmatmul.mubr.f32.gmra.mrb[40].mxu0 %v754_v44  ;;  %1142 = vmatmul.mubr.f32.gmra.mrb[40].mxu1 %v754_v44 }
 0x240   : > { %986 = vmatprep.mubr.f32.mxu0 %v3250_v27  ;;  %1147 = vmatprep.mubr.f32.mxu1 %v3250_v27 }
 0x243   : > { %987 = vmatmul.mubr.f32.gmra.mrb[42].mxu0 %v755_v45  ;;  %1148 = vmatmul.mubr.f32.gmra.mrb[42].mxu1 %v755_v45 }
 0x244   : > { %992 = vmatprep.mubr.f32.mxu0 %v3250_v27  ;;  %1153 = vmatprep.mubr.f32.mxu1 %v3250_v27 }
 0x247   : > { %993 = vmatmul.mubr.f32.gmra.mrb[44].mxu0 %v756_v48  ;;  %1154 = vmatmul.mubr.f32.gmra.mrb[44].mxu1 %v756_v48 }
 0x248   : > { %998 = vmatprep.mubr.f32.mxu0 %v3250_v27  ;;  %1159 = vmatprep.mubr.f32.mxu1 %v3250_v27 }
 0x24b   : > { %999 = vmatmul.mubr.f32.gmra.mrb[46].mxu0 %v757_v49  ;;  %1160 = vmatmul.mubr.f32.gmra.mrb[46].mxu1 %v757_v49 }
 0x2e2   : > { %v910_v56 = vpop.f32.mrb[16].mxu0  ;;  %v1071_v57 = vpop.f32.mrb[16].mxu1 }
 0x2e3   : > { %v3597_v58 = vadd.f32 %v910_v56, %v3594_v54  ;;  %v912_v61 = vpop.f32.mrb[17].mxu0  ;;  %v1073_v62 = vpop.f32.mrb[17].mxu1  ;;  %v3603_v0 = vadd.f32 %v1071_v57, %v3599_v59 }
 0x2e4   : > { %v3613_v8 = vadd.f32 %v912_v61, %v3605_v1  ;;  %v3626_v16 = vadd.f32 %v1073_v62, %v3615_v9 }
 0x2e5   : > { %1166 = vmax.xlane.f32.xlu0 %v3597_v58 }
 0x2e6   : > { %v916_v63 = vpop.f32.mrb[18].mxu0  ;;  %v1077_v27 = vpop.f32.mrb[18].mxu1 }
 0x2e7   : > { %v3608_v3 = vadd.f32 %v916_v63, %v3594_v54  ;;  %v918_v4 = vpop.f32.mrb[19].mxu0  ;;  %v1079_v5 = vpop.f32.mrb[19].mxu1  ;;  %v3634_v22 = vadd.f32 %v1077_v27, %v3599_v59 }
 0x2e8   : > { %v3618_v10 = vadd.f32 %v918_v4, %v3605_v1  ;;  %v3639_v28 = vadd.f32 %v1079_v5, %v3615_v9 }
 0x2e9   : > { %1168 = vmax.xlane.f32.xlu1 %v3608_v3  ;;  %1486 = vmax.xlane.f32.xlu0 %v3603_v0  ;;  %4445 = vst [vmem:[#allocation13_spill] sm:$0xff] %v3634_v22 }
 0x2ea   : > { %v922_v6 = vpop.f32.mrb[20].mxu0  ;;  %v1083_v7 = vpop.f32.mrb[20].mxu1  ;;  %4446 = vst [vmem:[#allocation14_spill] sm:$0xff] %v3639_v28 }
 0x2eb   : > { %v924_v11 = vpop.f32.mrb[21].mxu0  ;;  %v1085_v12 = vpop.f32.mrb[21].mxu1  ;;  %v3623_v13 = vadd.f32 %v922_v6, %v3594_v54  ;;  %v3653_v34 = vadd.f32 %v1083_v7, %v3599_v59 }
 0x2ec   : > { %v3672_v41 = vadd.f32 %v924_v11, %v3605_v1  ;;  %v3684_v47 = vadd.f32 %v1085_v12, %v3615_v9 }
 0x2ed   : > { %1328 = vmax.xlane.f32.xlu1 %v3618_v10  ;;  %1326 = vmax.xlane.f32.xlu0 %v3613_v8  ;;  %4447 = vst [vmem:[#allocation15_spill] sm:$0xff] %v3653_v34 }
 0x2ee   : > { %v928_v14 = vpop.f32.mrb[22].mxu0  ;;  %v1089_v15 = vpop.f32.mrb[22].mxu1  ;;  %4448 = vst [vmem:[#allocation16_spill] sm:$0xff] %v3684_v47 }
 0x2ef   : > { %v930_v17 = vpop.f32.mrb[23].mxu0  ;;  %v1091_v18 = vpop.f32.mrb[23].mxu1  ;;  %v3631_v19 = vadd.f32 %v928_v14, %v3594_v54  ;;  %v3642_v29 = vadd.f32 %v1089_v15, %v3599_v59 }
 0x2f0   : > { %v3656_v35 = vadd.f32 %v1091_v18, %v3615_v9  ;;  %v3699_v55 = vadd.f32 %v930_v17, %v3605_v1 }
 0x2f1   : > { %1170 = vmax.xlane.f32.xlu1 %v3623_v13  ;;  %1646 = vmax.xlane.f32.xlu0 %v3626_v16 }
 0x2f2   : > { %v934_v20 = vpop.f32.mrb[24].mxu0  ;;  %v1095_v21 = vpop.f32.mrb[24].mxu1 }
 0x2f3   : > { %v936_v23 = vpop.f32.mrb[25].mxu0  ;;  %v1097_v24 = vpop.f32.mrb[25].mxu1  ;;  %v3665_v38 = vadd.f32 %v934_v20, %v3594_v54  ;;  %v3679_v44 = vadd.f32 %v1095_v21, %v3599_v59 }
 0x2f4   : > { %v3702_v56 = vadd.f32 %v1097_v24, %v3615_v9  ;;  %v3719_v5 = vadd.f32 %v936_v23, %v3605_v1 }
 0x2f5   : > { %1172 = vmax.xlane.f32.xlu1 %v3631_v19  ;;  %1488 = vmax.xlane.f32.xlu0 %v3634_v22 }
 0x2f6   : > { %v940_v25 = vpop.f32.mrb[26].mxu0  ;;  %v1101_v26 = vpop.f32.mrb[26].mxu1 }
 0x2f7   : > { %v942_v30 = vpop.f32.mrb[27].mxu0  ;;  %v3644_v31 = vpop.f32.mrb[27].mxu1  ;;  %v3722_v6 = vadd.f32 %v940_v25, %v3594_v54  ;;  %v3739_v21 = vadd.f32 %v1101_v26, %v3599_v59 }
 0x2f8   : > { %v3742_v23 = vadd.f32 %v942_v30, %v3605_v1 }
 0x2f9   : > { %1492 = vmax.xlane.f32.xlu1 %v3642_v29  ;;  %1648 = vmax.xlane.f32.xlu0 %v3639_v28 }
 0x2fa   : > { %v3648_v32 = vpop.f32.mrb[28].mxu0  ;;  %v3650_v33 = vpop.f32.mrb[28].mxu1 }
 0x2fb   : > { %v3658_v36 = vpop.f32.mrb[29].mxu0  ;;  %v3660_v37 = vpop.f32.mrb[29].mxu1 }
 0x2fd   : > { %1652 = vmax.xlane.f32.xlu1 %v3656_v35  ;;  %1490 = vmax.xlane.f32.xlu0 %v3653_v34 }
 0x2fe   : > { %v3667_v39 = vpop.f32.mrb[30].mxu0  ;;  %v3669_v40 = vpop.f32.mrb[30].mxu1 }
 0x2ff   : > { %v3674_v42 = vpop.f32.mrb[31].mxu0  ;;  %v3676_v43 = vpop.f32.mrb[31].mxu1 }
 0x301   : > { %1174 = vmax.xlane.f32.xlu1 %v3665_v38  ;;  %1330 = vmax.xlane.f32.xlu0 %v3672_v41 }
 0x302   : > { %v958_v45 = vpop.f32.mrb[32].mxu0  ;;  %v1119_v46 = vpop.f32.mrb[32].mxu1 }
 0x303   : > { %v3687_v48 = vadd.f32 %v958_v45, %v3594_v54  ;;  %v3690_v49 = vadd.f32 %v1119_v46, %v3599_v59  ;;  %v3692_v50 = vpop.f32.mrb[33].mxu0  ;;  %v3694_v51 = vpop.f32.mrb[33].mxu1 }
 0x305   : > { %1494 = vmax.xlane.f32.xlu1 %v3679_v44  ;;  %1650 = vmax.xlane.f32.xlu0 %v3684_v47 }
 0x306   : > { %v964_v52 = vpop.f32.mrb[34].mxu0  ;;  %v1125_v53 = vpop.f32.mrb[34].mxu1 }
 0x307   : > { %v3705_v57 = vadd.f32 %v964_v52, %v3594_v54  ;;  %v3708_v60 = vadd.f32 %v1125_v53, %v3599_v59  ;;  %v966_v61 = vpop.f32.mrb[35].mxu0  ;;  %v1127_v62 = vpop.f32.mrb[35].mxu1 }
 0x308   : > { %v3711_v63 = vadd.f32 %v966_v61, %v3605_v1  ;;  %v3714_v27 = vadd.f32 %v1127_v62, %v3615_v9  ;;  %v3760_v61 = vadd.f32 %v3644_v31, %v3615_v9  ;;  %v3764_v62 = vadd.f32 %v3648_v32, %v3594_v54 }
 0x309   : > { %1654 = vmax.xlane.f32.xlu1 %v3702_v56  ;;  %1332 = vmax.xlane.f32.xlu0 %v3699_v55 }
 0x30a   : > { %v970_v2 = vpop.f32.mrb[36].mxu0  ;;  %v1131_v4 = vpop.f32.mrb[36].mxu1  ;;  %4449 = vst [vmem:[#allocation17_spill] sm:$0xff] %v3760_v61  ;;  %4450 = vst [vmem:[#allocation18_spill] sm:$0xff] %v3764_v62 }
 0x30b   : > { %v3725_v7 = vadd.f32 %v970_v2, %v3594_v54  ;;  %v3728_v11 = vadd.f32 %v1131_v4, %v3599_v59  ;;  %v972_v12 = vpop.f32.mrb[37].mxu0  ;;  %v1133_v14 = vpop.f32.mrb[37].mxu1 }
 0x30c   : > { %v3731_v15 = vadd.f32 %v972_v12, %v3605_v1  ;;  %v3734_v17 = vadd.f32 %v1133_v14, %v3615_v9 }
 0x30d   : > { %1176 = vmax.xlane.f32.xlu1 %v3722_v6  ;;  %1334 = vmax.xlane.f32.xlu0 %v3719_v5 }
 0x30e   : > { %v976_v18 = vpop.f32.mrb[38].mxu0  ;;  %v1137_v20 = vpop.f32.mrb[38].mxu1 }
 0x30f   : > { %v3745_v24 = vadd.f32 %v976_v18, %v3594_v54  ;;  %v3748_v25 = vadd.f32 %v1137_v20, %v3599_v59  ;;  %v978_v45 = vpop.f32.mrb[39].mxu0  ;;  %v1139_v46 = vpop.f32.mrb[39].mxu1 }
 0x310   : > { %v3751_v52 = vadd.f32 %v978_v45, %v3605_v1  ;;  %v3754_v53 = vadd.f32 %v1139_v46, %v3615_v9  ;;  %v3782_v45 = vadd.f32 %v3650_v33, %v3599_v59  ;;  %v3786_v46 = vadd.f32 %v3658_v36, %v3605_v1 }
 0x311   : > { %1496 = vmax.xlane.f32.xlu1 %v3739_v21  ;;  %1336 = vmax.xlane.f32.xlu0 %v3742_v23 }
 0x312   : > { %v982_v26 = vpop.f32.mrb[40].mxu0  ;;  %v1143_v30 = vpop.f32.mrb[40].mxu1  ;;  %4451 = vst [vmem:[#allocation19_spill] sm:$0xff] %v3782_v45  ;;  %4452 = vst [vmem:[#allocation20_spill] sm:$0xff] %v3786_v46 }
 0x313   : > { %v3767_v2 = vadd.f32 %v982_v26, %v3594_v54  ;;  %v3770_v4 = vadd.f32 %v1143_v30, %v3599_v59  ;;  %v984_v12 = vpop.f32.mrb[41].mxu0  ;;  %v1145_v14 = vpop.f32.mrb[41].mxu1 }
 0x314   : > { %v3773_v18 = vadd.f32 %v984_v12, %v3605_v1  ;;  %v3776_v20 = vadd.f32 %v1145_v14, %v3615_v9 }
 0x315   : > { %1656 = vmax.xlane.f32.xlu1 %v3760_v61  ;;  %1178 = vmax.xlane.f32.xlu0 %v3764_v62 }
 0x316   : > { %v988_v31 = vpop.f32.mrb[42].mxu0  ;;  %v1149_v32 = vpop.f32.mrb[42].mxu1 }
 0x317   : > { %v3789_v26 = vadd.f32 %v988_v31, %v3594_v54  ;;  %v3792_v30 = vadd.f32 %v1149_v32, %v3599_v59  ;;  %v990_v12 = vpop.f32.mrb[43].mxu0  ;;  %v1151_v14 = vpop.f32.mrb[43].mxu1  ;;  %v3804_v31 = vadd.f32 %v3660_v37, %v3615_v9  ;;  %v3808_v32 = vadd.f32 %v3667_v39, %v3594_v54 }
 0x318   : > { %v3795_v34 = vadd.f32 %v990_v12, %v3605_v1  ;;  %v3798_v47 = vadd.f32 %v1151_v14, %v3615_v9 }
 0x319   : > { %1498 = vmax.xlane.f32.xlu1 %v3782_v45  ;;  %1338 = vmax.xlane.f32.xlu0 %v3786_v46  ;;  %4453 = vst [vmem:[#allocation21_spill] sm:$0xff] %v3804_v31  ;;  %4454 = vst [vmem:[#allocation22_spill] sm:$0xff] %v3808_v32 }
 0x31a   : > { %v994_v33 = vpop.f32.mrb[44].mxu0  ;;  %v1155_v36 = vpop.f32.mrb[44].mxu1 }
 0x31b   : > { %v3811_v12 = vadd.f32 %v994_v33, %v3594_v54  ;;  %v3814_v14 = vadd.f32 %v1155_v36, %v3599_v59  ;;  %v996_v22 = vpop.f32.mrb[45].mxu0  ;;  %v1157_v28 = vpop.f32.mrb[45].mxu1  ;;  %v3826_v33 = vadd.f32 %v3669_v40, %v3599_v59  ;;  %v3830_v36 = vadd.f32 %v3674_v42, %v3605_v1 }
 0x31c   : > { %v3817_v46 = vadd.f32 %v996_v22, %v3605_v1  ;;  %v3820_v45 = vadd.f32 %v1157_v28, %v3615_v9  ;;  %v3848_v40 = vadd.f32 %v3676_v43, %v3615_v9 }
 0x31d   : > { %1658 = vmax.xlane.f32.xlu1 %v3804_v31  ;;  %1180 = vmax.xlane.f32.xlu0 %v3808_v32 }
 0x31e   : > { %4455 = vst [vmem:[#allocation23_spill] sm:$0xff] %v3820_v45  ;;  %v1000_v37 = vpop.f32.mrb[46].mxu0  ;;  %v1161_v39 = vpop.f32.mrb[46].mxu1 }
 0x31f   : > { %v3833_v22 = vadd.f32 %v1000_v37, %v3594_v54  ;;  %v3836_v28 = vadd.f32 %v1161_v39, %v3599_v59  ;;  %v1002_v62 = vpop.f32.mrb[47].mxu0  ;;  %v1163_v31 = vpop.f32.mrb[47].mxu1  ;;  %v3854_v54 = vadd.f32 %v3692_v50, %v3605_v1  ;;  %v3860_v59 = vadd.f32 %v3694_v51, %v3615_v9 }
 0x320   : > { %v3839_v32 = vadd.f32 %v1002_v62, %v3605_v1  ;;  %v3842_v61 = vadd.f32 %v1163_v31, %v3615_v9 }
 0x321   : > { %4456 = vst [vmem:[#allocation24_spill] sm:$0xff] %v3833_v22  ;;  %4457 = vst [vmem:[#allocation25_spill] sm:$0xff] %v3836_v28  ;;  %1500 = vmax.xlane.f32.xlu1 %v3826_v33  ;;  %1340 = vmax.xlane.f32.xlu0 %v3830_v36 }
 0x322   : > { %4458 = vst [vmem:[#allocation26_spill] sm:$0xff] %v3839_v32  ;;  %4459 = vst [vmem:[#allocation27_spill] sm:$0xff] %v3842_v61 }
 0x325   : > { %1660 = vmax.xlane.f32.xlu1 %v3848_v40  ;;  %1182 = vmax.xlane.f32.xlu0 %v3687_v48 }
 0x329   : > { %1502 = vmax.xlane.f32.xlu1 %v3690_v49  ;;  %1342 = vmax.xlane.f32.xlu0 %v3854_v54 }
 0x32d   : > { %1662 = vmax.xlane.f32.xlu1 %v3860_v59  ;;  %1184 = vmax.xlane.f32.xlu0 %v3705_v57 }
 0x331   : > { %1504 = vmax.xlane.f32.xlu1 %v3708_v60  ;;  %1344 = vmax.xlane.f32.xlu0 %v3711_v63 }
 0x335   : > { %1664 = vmax.xlane.f32.xlu1 %v3714_v27  ;;  %1186 = vmax.xlane.f32.xlu0 %v3725_v7 }
 0x339   : > { %1506 = vmax.xlane.f32.xlu1 %v3728_v11  ;;  %1346 = vmax.xlane.f32.xlu0 %v3731_v15 }
 0x33d   : > { %1666 = vmax.xlane.f32.xlu1 %v3734_v17  ;;  %1188 = vmax.xlane.f32.xlu0 %v3745_v24 }
 0x341   : > { %1508 = vmax.xlane.f32.xlu1 %v3748_v25  ;;  %1348 = vmax.xlane.f32.xlu0 %v3751_v52 }
 0x345   : > { %1668 = vmax.xlane.f32.xlu1 %v3754_v53  ;;  %1190 = vmax.xlane.f32.xlu0 %v3767_v2 }
 0x349   : > { %1510 = vmax.xlane.f32.xlu1 %v3770_v4  ;;  %1350 = vmax.xlane.f32.xlu0 %v3773_v18 }
 0x34d   : > { %1670 = vmax.xlane.f32.xlu1 %v3776_v20  ;;  %1192 = vmax.xlane.f32.xlu0 %v3789_v26 }
 0x351   : > { %1512 = vmax.xlane.f32.xlu1 %v3792_v30  ;;  %1352 = vmax.xlane.f32.xlu0 %v3795_v34 }
 0x355   : > { %1672 = vmax.xlane.f32.xlu1 %v3798_v47  ;;  %1194 = vmax.xlane.f32.xlu0 %v3811_v12 }
 0x359   : > { %1514 = vmax.xlane.f32.xlu1 %v3814_v14  ;;  %1354 = vmax.xlane.f32.xlu0 %v3817_v46 }
 0x35d   : > { %1674 = vmax.xlane.f32.xlu1 %v3820_v45  ;;  %1196 = vmax.xlane.f32.xlu0 %v3833_v22 }
 0x361   : > { %1516 = vmax.xlane.f32.xlu1 %v3836_v28  ;;  %1356 = vmax.xlane.f32.xlu0 %v3839_v32 }
 0x365   : > { %1676 = vmax.xlane.f32.xlu1 %v3842_v61 }
 0x372   : > { %v1167_v1 = vpop.xlane.xlu0 %1166 }
 0x373   : > { %v1198_v9 = vsub.f32 %v3597_v58, %v1167_v1 }
 0x375   : > { %v1214_v42 = vmul.f32 1.442695, %v1198_v9 }
 0x376   : > { %v1169_v43 = vpop.xlane.xlu1 %1168  ;;  %v1487_v50 = vpop.xlane.xlu0 %1486 }
 0x377   : > { %2860 = vpow2.f32 %v1214_v42  ;;  %v1199_v51 = vsub.f32 %v3608_v3, %v1169_v43  ;;  %v1518_v62 = vsub.f32 %v3603_v0, %v1487_v50 }
 0x379   : > { %v1216_v31 = vmul.f32 1.442695, %v1199_v51  ;;  %v1534_v37 = vmul.f32 1.442695, %v1518_v62  ;;  %v1806_v62 = vld [vmem:[#allocation5] sm:$0xff] }
 0x37a   : > { %v1329_v39 = vpop.xlane.xlu1 %1328  ;;  %v1327_v22 = vpop.xlane.xlu0 %1326 }
 0x37b   : > { %2862 = vpow2.f32 %v1216_v31  ;;  %v1358_v28 = vsub.f32 %v3613_v8, %v1327_v22  ;;  %v1359_v9 = vsub.f32 %v3618_v10, %v1329_v39  ;;  %v1807_v31 = vld [vmem:[#allocation5 + $0x8] sm:$0xff] }
 0x37c   : > { %2864 = vpow2.f32 %v1534_v37  ;;  %v2715_v37 = vpack.c.bf16 %v1807_v31, %v1806_v62  ;;  %v1826_v62 = vld [vmem:[#allocation5 + $0xa0] sm:$0xff]  ;;  %v1827_v31 = vld [vmem:[#allocation5 + $0xa8] sm:$0xff] }
 0x37d   : > { %v1374_v61 = vmul.f32 1.442695, %v1358_v28  ;;  %v1376_v22 = vmul.f32 1.442695, %v1359_v9  ;;  %v1823_v28 = vld [vmem:[#allocation5 + $0x88] sm:$0xff] }
 0x37e   : > { %v1171_v32 = vpop.xlane.xlu1 %1170  ;;  %v1647_v45 = vpop.xlane.xlu0 %1646 }
 0x37f   : > { %v1200_v58 = vsub.f32 %v3623_v13, %v1171_v32  ;;  %v1678_v1 = vsub.f32 %v3626_v16, %v1647_v45  ;;  %2866 = vpow2.f32 %v1374_v61  ;;  %v1822_v32 = vld [vmem:[#allocation5 + $0x80] sm:$0xff] }
 0x381   : > { %v3898_v3 = vpop.eup %2860  ;;  %v1218_v0 = vmul.f32 1.442695, %v1200_v58  ;;  %v1694_v42 = vmul.f32 1.442695, %v1678_v1 }
 0x382   : > { %v1173_v43 = vpop.xlane.xlu1 %1172  ;;  %1246 = vadd.xlane.f32.xlu1 %v3898_v3  ;;  %v3901_v50 = vpop.xlane.xlu0 %1488 }
 0x383   : > { %2868 = vpow2.f32 %v1218_v0  ;;  %v1201_v8 = vsub.f32 %v3631_v19, %v1173_v43  ;;  %v2713_v19 = vpack.c.bf16 %v1823_v28, %v1822_v32  ;;  %v1824_v0 = vld [vmem:[#allocation5 + $0x90] sm:$0xff] }
 0x384   : > { %2870 = vpow2.f32 %v1694_v42  ;;  %v1825_v42 = vld [vmem:[#allocation5 + $0x98] sm:$0xff] }
 0x385   : > { %v3904_v13 = vpop.eup %2862  ;;  %v1220_v16 = vmul.f32 1.442695, %v1201_v8  ;;  %2714 = vmatprep.subr.bf16.mxu0 %v2713_v19  ;;  %v2717_v43 = vpack.c.bf16 %v1825_v42, %v1824_v0  ;;  %v1808_v8 = vld [vmem:[#allocation5 + $0x10] sm:$0xff]  ;;  %v1811_v0 = vld [vmem:[#allocation5 + $0x28] sm:$0xff] }
 0x386   : > { %v3906_v45 = vpop.eup %2864  ;;  %v1493_v10 = vpop.xlane.xlu1 %1492  ;;  %1248 = vadd.xlane.f32.xlu1 %v3904_v13  ;;  %2716 = vmatpush3.bf16.msra.mxu0 %v2715_v37 }
 0x387   : > { %4460 = vst [vmem:[#allocation28_spill] sm:$0xff] %v3906_v45  ;;  %v3909_v61 = vpop.xlane.xlu0 %1648  ;;  %2872 = vpow2.f32 %v1220_v16  ;;  %v1521_v51 = vsub.f32 %v3642_v29, %v1493_v10  ;;  %1566 = vadd.xlane.f32.xlu0 %v3906_v45  ;;  %v1809_v16 = vld [vmem:[#allocation5 + $0x18] sm:$0xff]  ;;  %2718 = vmatprep.subr.bf16.mxu0 %v2717_v43  ;;  %v1854_v45 = vld [vmem:[#allocation5 + $0x180] sm:$0xff] }
 0x388   : > { %2874 = vpow2.f32 %v1376_v22  ;;  %v2719_v22 = vpack.c.bf16 %v1809_v16, %v1808_v8 }
 0x389   : > { %v1540_v39 = vmul.f32 1.442695, %v1521_v51  ;;  %v3913_v58 = vpop.eup %2866 }
 0x38a   : > { %v1653_v1 = vpop.xlane.xlu1 %1652  ;;  %2720 = vmatpush3.bf16.msra.mxu0 %v2719_v22 }
 0x38b   : > { %v3915_v9 = vpop.xlane.xlu0 %1490  ;;  %2876 = vpow2.f32 %v1540_v39  ;;  %v1681_v29 = vsub.f32 %v3656_v35, %v1653_v1  ;;  %1406 = vadd.xlane.f32.xlu0 %v3913_v58  ;;  %v2721_v39 = vpack.c.bf16 %v1827_v31, %v1826_v62  ;;  %v1810_v1 = vld [vmem:[#allocation5 + $0x20] sm:$0xff]  ;;  %v1812_v62 = vld [vmem:[#allocation5 + $0x30] sm:$0xff]  ;;  %v1813_v31 = vld [vmem:[#allocation5 + $0x38] sm:$0xff] }
 0x38c   : > { %v2723_v42 = vpack.c.bf16 %v1811_v0, %v1810_v1 }
 0x38d   : > { %v3919_v10 = vpop.eup %2868  ;;  %v1700_v32 = vmul.f32 1.442695, %v1681_v29  ;;  %2722 = vmatprep.subr.bf16.mxu0 %v2721_v39 }
 0x38e   : > { %4461 = vst [vmem:[#allocation29_spill] sm:$0xff] %v3919_v10  ;;  %v3921_v28 = vpop.eup %2870  ;;  %v1175_v51 = vpop.xlane.xlu1 %1174  ;;  %1250 = vadd.xlane.f32.xlu1 %v3919_v10  ;;  %2724 = vmatpush3.bf16.msra.mxu0 %v2723_v42  ;;  %v1830_v42 = vld [vmem:[#allocation5 + $0xc0] sm:$0xff] }
 0x38f   : > { %4462 = vst [vmem:[#allocation30_spill] sm:$0xff] %v3921_v28  ;;  %v1331_v19 = vpop.xlane.xlu0 %1330  ;;  %2878 = vpow2.f32 %v1700_v32  ;;  %v1202_v35 = vsub.f32 %v3665_v38, %v1175_v51  ;;  %1726 = vadd.xlane.f32.xlu0 %v3921_v28  ;;  %v1828_v38 = vld [vmem:[#allocation5 + $0xb0] sm:$0xff]  ;;  %v1829_v51 = vld [vmem:[#allocation5 + $0xb8] sm:$0xff]  ;;  %v1839_v28 = vld [vmem:[#allocation5 + $0x108] sm:$0xff] }
 0x390   : > { %v1360_v37 = vsub.f32 %v3672_v41, %v1331_v19  ;;  %v2725_v19 = vpack.c.bf16 %v1829_v51, %v1828_v38  ;;  %v1814_v51 = vld [vmem:[#allocation5 + $0x40] sm:$0xff] }
 0x391   : > { %v3927_v29 = vpop.eup %2872  ;;  %v1222_v43 = vmul.f32 1.442695, %v1202_v35  ;;  %v2727_v35 = vpack.c.bf16 %v1813_v31, %v1812_v62  ;;  %v1815_v62 = vld [vmem:[#allocation5 + $0x48] sm:$0xff] }
 0x392   : > { %4463 = vst [vmem:[#allocation31_spill] sm:$0xff] %v3927_v29  ;;  %v1378_v8 = vmul.f32 1.442695, %v1360_v37  ;;  %v3929_v16 = vpop.eup %2874  ;;  %v1495_v22 = vpop.xlane.xlu1 %1494  ;;  %1252 = vadd.xlane.f32.xlu1 %v3927_v29  ;;  %2726 = vmatprep.subr.bf16.mxu0 %v2725_v19  ;;  %v1838_v19 = vld [vmem:[#allocation5 + $0x100] sm:$0xff] }
 0x393   : > { %v3932_v32 = vpop.xlane.xlu0 %1650  ;;  %2880 = vpow2.f32 %v1222_v43  ;;  %v1522_v41 = vsub.f32 %v3679_v44, %v1495_v22  ;;  %1408 = vadd.xlane.f32.xlu0 %v3929_v16  ;;  %2728 = vmatpush3.bf16.msra.mxu0 %v2727_v35  ;;  %v1831_v43 = vld [vmem:[#allocation5 + $0xc8] sm:$0xff] }
 0x394   : > { %2882 = vpow2.f32 %v1378_v8  ;;  %v2729_v38 = vpack.c.bf16 %v1831_v43, %v1830_v42  ;;  %v1855_v8 = vld [vmem:[#allocation5 + $0x188] sm:$0xff] }
 0x395   : > { %v3936_v37 = vpop.eup %2876  ;;  %v1542_v39 = vmul.f32 1.442695, %v1522_v41  ;;  %v3941_v31 = vpack.c.bf16 %v1855_v8, %v1854_v45  ;;  %v2731_v41 = vpack.c.bf16 %v1815_v62, %v1814_v51  ;;  %v1856_v45 = vld [vmem:[#allocation5 + $0x190] sm:$0xff]  ;;  %v1841_v62 = vld [vmem:[#allocation5 + $0x118] sm:$0xff] }
 0x396   : > { %4464 = vst [vmem:[#allocation32_spill] sm:$0xff] %v3936_v37  ;;  %v1655_v1 = vpop.xlane.xlu1 %1654  ;;  %1572 = vadd.xlane.f32.xlu1 %v3936_v37  ;;  %2730 = vmatprep.subr.bf16.mxu0 %v2729_v38  ;;  %v3945_v37 = vpack.c.bf16 %v1839_v28, %v1838_v19  ;;  %v1857_v28 = vld [vmem:[#allocation5 + $0x198] sm:$0xff]  ;;  %v1840_v51 = vld [vmem:[#allocation5 + $0x110] sm:$0xff] }
 0x397   : > { %v1333_v0 = vpop.xlane.xlu0 %1332  ;;  %2884 = vpow2.f32 %v1542_v39  ;;  %v1682_v44 = vsub.f32 %v3702_v56, %v1655_v1  ;;  %2777 = vmatprep.subr.bf16.mxu1 %v3941_v31  ;;  %v1832_v56 = vld [vmem:[#allocation5 + $0xd0] sm:$0xff]  ;;  %v1833_v1 = vld [vmem:[#allocation5 + $0xd8] sm:$0xff]  ;;  %2732 = vmatpush3.bf16.msra.mxu0 %v2731_v41  ;;  %v3952_v38 = vpack.c.bf16 %v1857_v28, %v1856_v45  ;;  %v1819_v28 = vld [vmem:[#allocation5 + $0x68] sm:$0xff] }
 0x398   : > { %v1361_v22 = vsub.f32 %v3699_v55, %v1333_v0  ;;  %2785 = vmatpush3.bf16.msra.mxu1 %v3945_v37  ;;  %v2733_v43 = vpack.c.bf16 %v1833_v1, %v1832_v56  ;;  %v1858_v56 = vld [vmem:[#allocation5 + $0x1a0] sm:$0xff] }
 0x399   : > { %v3943_v29 = vpop.eup %2878  ;;  %v1702_v35 = vmul.f32 1.442695, %v1682_v44  ;;  %v1816_v44 = vld [vmem:[#allocation5 + $0x50] sm:$0xff]  ;;  %2778 = vmatprep.subr.bf16.mxu1 %v3952_v38 }
 0x39a   : > { %4465 = vst [vmem:[#allocation33_spill] sm:$0xff] %v3943_v29  ;;  %v1380_v10 = vmul.f32 1.442695, %v1361_v22  ;;  %v1177_v39 = vpop.xlane.xlu1 %1176  ;;  %1732 = vadd.xlane.f32.xlu1 %v3943_v29  ;;  %v1817_v22 = vld [vmem:[#allocation5 + $0x58] sm:$0xff]  ;;  %2734 = vmatprep.subr.bf16.mxu0 %v2733_v43  ;;  %v1818_v43 = vld [vmem:[#allocation5 + $0x60] sm:$0xff] }
 0x39b   : > { %v1335_v55 = vpop.xlane.xlu0 %1334  ;;  %2886 = vpow2.f32 %v1702_v35  ;;  %v1203_v0 = vsub.f32 %v3722_v6, %v1177_v39  ;;  %v2735_v8 = vpack.c.bf16 %v1817_v22, %v1816_v44  ;;  %v3956_v6 = vpack.c.bf16 %v1841_v62, %v1840_v51  ;;  %v1842_v51 = vld [vmem:[#allocation5 + $0x120] sm:$0xff]  ;;  %v1843_v62 = vld [vmem:[#allocation5 + $0x128] sm:$0xff] }
 0x39c   : > { %v1362_v42 = vsub.f32 %v3719_v5, %v1335_v55  ;;  %2888 = vpow2.f32 %v1380_v10  ;;  %v1834_v10 = vld [vmem:[#allocation5 + $0xe0] sm:$0xff]  ;;  %v1835_v55 = vld [vmem:[#allocation5 + $0xe8] sm:$0xff]  ;;  %v2739_v22 = vpack.c.bf16 %v1819_v28, %v1818_v43  ;;  %v1821_v28 = vld [vmem:[#allocation5 + $0x78] sm:$0xff] }
 0x39d   : > { %v3954_v19 = vpop.eup %2880  ;;  %v1224_v35 = vmul.f32 1.442695, %v1203_v0  ;;  %4467 = vst [vmem:[#allocation35_spill] sm:$0xff] %v3956_v6  ;;  %2736 = vmatpush3.bf16.msra.mxu0 %v2735_v8  ;;  %v2737_v0 = vpack.c.bf16 %v1835_v55, %v1834_v10  ;;  %2786 = vmatpush3.bf16.msra.mxu1 %v3956_v6  ;;  %v1860_v10 = vld [vmem:[#allocation5 + $0x1b0] sm:$0xff]  ;;  %v4471_v55 = vld [vmem:[#allocation17_spill] sm:$0xff] }
 0x39e   : > { %4466 = vst [vmem:[#allocation34_spill] sm:$0xff] %v3954_v19  ;;  %v1382_v29 = vmul.f32 1.442695, %v1362_v42  ;;  %v3958_v5 = vpop.eup %2882  ;;  %v1497_v41 = vpop.xlane.xlu1 %1496  ;;  %1254 = vadd.xlane.f32.xlu1 %v3954_v19  ;;  %v1859_v42 = vld [vmem:[#allocation5 + $0x1a8] sm:$0xff]  ;;  %v3970_v19 = vpack.c.bf16 %v1843_v62, %v1842_v51 }
 0x39f   : > { %4468 = vst [vmem:[#allocation36_spill] sm:$0xff] %v3958_v5  ;;  %v1337_v39 = vpop.xlane.xlu0 %1336  ;;  %2890 = vpow2.f32 %v1224_v35  ;;  %v1523_v1 = vsub.f32 %v3739_v21, %v1497_v41  ;;  %1410 = vadd.xlane.f32.xlu0 %v3958_v5  ;;  %v3966_v44 = vpack.c.bf16 %v1859_v42, %v1858_v56  ;;  %2738 = vmatprep.subr.bf16.mxu0 %v2737_v0  ;;  %v4472_v42 = vld [vmem:[#allocation18_spill] sm:$0xff]  ;;  %v1820_v0 = vld [vmem:[#allocation5 + $0x70] sm:$0xff]  ;;  %v1845_v5 = vld [vmem:[#allocation5 + $0x138] sm:$0xff] }
 0x3a0   : > { %v1363_v45 = vsub.f32 %v3742_v23, %v1337_v39  ;;  %2892 = vpow2.f32 %v1382_v29  ;;  %v1836_v29 = vld [vmem:[#allocation5 + $0xf0] sm:$0xff]  ;;  %v1837_v39 = vld [vmem:[#allocation5 + $0xf8] sm:$0xff]  ;;  %v2743_v62 = vpack.c.bf16 %v1821_v28, %v1820_v0 }
 0x3a1   : > { %4469 = vst [vmem:[#allocation37_spill] sm:$0xff] %v3966_v44  ;;  %v3968_v35 = vpop.eup %2884  ;;  %v1544_v21 = vmul.f32 1.442695, %v1523_v1  ;;  %2779 = vmatprep.subr.bf16.mxu1 %v3966_v44  ;;  %2740 = vmatpush3.bf16.msra.mxu0 %v2739_v22  ;;  %v2741_v1 = vpack.c.bf16 %v1837_v39, %v1836_v29  ;;  %v1862_v29 = vld [vmem:[#allocation5 + $0x1c0] sm:$0xff]  ;;  %v1863_v39 = vld [vmem:[#allocation5 + $0x1c8] sm:$0xff] }
 0x3a2   : > { %4470 = vst [vmem:[#allocation38_spill] sm:$0xff] %v3968_v35  ;;  %v1384_v41 = vmul.f32 1.442695, %v1363_v45  ;;  %v1657_v23 = vpop.xlane.xlu1 %1656  ;;  %1574 = vadd.xlane.f32.xlu1 %v3968_v35  ;;  %v1861_v45 = vld [vmem:[#allocation5 + $0x1b8] sm:$0xff]  ;;  %2787 = vmatpush3.bf16.msra.mxu1 %v3970_v19  ;;  %v1844_v35 = vld [vmem:[#allocation5 + $0x130] sm:$0xff] }
 0x3a3   : > { %v1179_v8 = vpop.xlane.xlu0 %1178  ;;  %2894 = vpow2.f32 %v1544_v21  ;;  %v1683_v56 = vsub.f32 %v4471_v55, %v1657_v23  ;;  %v3977_v51 = vpack.c.bf16 %v1861_v45, %v1860_v10  ;;  %2742 = vmatprep.subr.bf16.mxu0 %v2741_v1  ;;  %v3981_v23 = vpack.c.bf16 %v1845_v5, %v1844_v35  ;;  %v4474_v10 = vld [vmem:[#allocation19_spill] sm:$0xff]  ;;  %v1846_v35 = vld [vmem:[#allocation5 + $0x140] sm:$0xff] }
 0x3a4   : > { %v1204_v43 = vsub.f32 %v4472_v42, %v1179_v8  ;;  %2896 = vpow2.f32 %v1384_v41  ;;  %v3990_v5 = vpack.c.bf16 %v1863_v39, %v1862_v29  ;;  %v4478_v29 = vld [vmem:[#allocation21_spill] sm:$0xff] }
 0x3a5   : > { %v3979_v44 = vpop.eup %2886  ;;  %v1704_v21 = vmul.f32 1.442695, %v1683_v56  ;;  %2780 = vmatprep.subr.bf16.mxu1 %v3977_v51  ;;  %v4475_v56 = vld [vmem:[#allocation20_spill] sm:$0xff]  ;;  %2744 = vmatpush3.bf16.msra.mxu0 %v2743_v62 }
 0x3a6   : > { %v1226_v6 = vmul.f32 1.442695, %v1204_v43  ;;  %v3983_v22 = vpop.eup %2888  ;;  %v1499_v8 = vpop.xlane.xlu1 %1498  ;;  %1734 = vadd.xlane.f32.xlu1 %v3979_v44  ;;  %v1847_v43 = vld [vmem:[#allocation5 + $0x148] sm:$0xff]  ;;  %2788 = vmatpush3.bf16.msra.mxu1 %v3981_v23 }
 0x3a7   : > { %4473 = vst [vmem:[#allocation17_spill] sm:$0xff] %v3983_v22  ;;  %v1339_v41 = vpop.xlane.xlu0 %1338  ;;  %2898 = vpow2.f32 %v1704_v21  ;;  %v1524_v55 = vsub.f32 %v4474_v10, %v1499_v8  ;;  %1412 = vadd.xlane.f32.xlu0 %v3983_v22  ;;  %v3993_v1 = vpack.c.bf16 %v1847_v43, %v1846_v35  ;;  %2746 = vmatprep.subr.bf16.mxu0 %v3941_v31  ;;  %v4479_v31 = vld [vmem:[#allocation22_spill] sm:$0xff] }
 0x3a8   : > { %v1364_v42 = vsub.f32 %v4475_v56, %v1339_v41  ;;  %2900 = vpow2.f32 %v1226_v6  ;;  %2781 = vmatprep.subr.bf16.mxu1 %v3990_v5  ;;  %v1864_v41 = vld [vmem:[#allocation5 + $0x1d0] sm:$0xff]  ;;  %v1865_v6 = vld [vmem:[#allocation5 + $0x1d8] sm:$0xff] }
 0x3a9   : > { %v3996_v45 = vpop.eup %2890  ;;  %v1546_v0 = vmul.f32 1.442695, %v1524_v55  ;;  %v4005_v56 = vpack.c.bf16 %v1865_v6, %v1864_v41  ;;  %v1848_v55 = vld [vmem:[#allocation5 + $0x150] sm:$0xff]  ;;  %v1866_v41 = vld [vmem:[#allocation5 + $0x1e0] sm:$0xff]  ;;  %v1867_v6 = vld [vmem:[#allocation5 + $0x1e8] sm:$0xff] }
 0x3aa   : > { %4476 = vst [vmem:[#allocation18_spill] sm:$0xff] %v3996_v45  ;;  %v1386_v28 = vmul.f32 1.442695, %v1364_v42  ;;  %v3999_v21 = vpop.eup %2892  ;;  %v1659_v62 = vpop.xlane.xlu1 %1658  ;;  %1256 = vadd.xlane.f32.xlu1 %v3996_v45  ;;  %v1849_v42 = vld [vmem:[#allocation5 + $0x158] sm:$0xff]  ;;  %2789 = vmatpush3.bf16.msra.mxu1 %v3993_v1 }
 0x3ab   : > { %4477 = vst [vmem:[#allocation19_spill] sm:$0xff] %v3999_v21  ;;  %v1181_v8 = vpop.xlane.xlu0 %1180  ;;  %2902 = vpow2.f32 %v1546_v0  ;;  %v1684_v39 = vsub.f32 %v4478_v29, %v1659_v62  ;;  %1414 = vadd.xlane.f32.xlu0 %v3999_v21  ;;  %v4008_v35 = vpack.c.bf16 %v1849_v42, %v1848_v55  ;;  %2782 = vmatprep.subr.bf16.mxu1 %v4005_v56 }
 0x3ac   : > { %v1205_v10 = vsub.f32 %v4479_v31, %v1181_v8  ;;  %2904 = vpow2.f32 %v1386_v28  ;;  %v4019_v31 = vpack.c.bf16 %v1867_v6, %v1866_v41 }
 0x3ad   : > { %v4010_v43 = vpop.eup %2894  ;;  %v1706_v45 = vmul.f32 1.442695, %v1684_v39  ;;  %v1850_v39 = vld [vmem:[#allocation5 + $0x160] sm:$0xff] }
 0x3ae   : > { %4480 = vst [vmem:[#allocation20_spill] sm:$0xff] %v4010_v43  ;;  %v1228_v22 = vmul.f32 1.442695, %v1205_v10  ;;  %v4013_v0 = vpop.eup %2896  ;;  %v1501_v62 = vpop.xlane.xlu1 %1500  ;;  %1576 = vadd.xlane.f32.xlu1 %v4010_v43  ;;  %v1851_v10 = vld [vmem:[#allocation5 + $0x168] sm:$0xff]  ;;  %2790 = vmatpush3.bf16.msra.mxu1 %v4008_v35 }
 0x3af   : > { %4481 = vst [vmem:[#allocation21_spill] sm:$0xff] %v4013_v0  ;;  %v1341_v8 = vpop.xlane.xlu0 %1340  ;;  %2906 = vpow2.f32 %v1706_v45  ;;  %v1525_v28 = vsub.f32 %v3826_v33, %v1501_v62  ;;  %1416 = vadd.xlane.f32.xlu0 %v4013_v0  ;;  %v4022_v55 = vpack.c.bf16 %v1851_v10, %v1850_v39  ;;  %2783 = vmatprep.subr.bf16.mxu1 %v4019_v31  ;;  %v1868_v62 = vld [vmem:[#allocation5 + $0x1f0] sm:$0xff] }
 0x3b0   : > { %v1365_v29 = vsub.f32 %v3830_v36, %v1341_v8  ;;  %2908 = vpow2.f32 %v1228_v22  ;;  %v1869_v8 = vld [vmem:[#allocation5 + $0x1f8] sm:$0xff] }
 0x3b1   : > { %v4024_v42 = vpop.eup %2898  ;;  %v1548_v43 = vmul.f32 1.442695, %v1525_v28  ;;  %v4033_v6 = vpack.c.bf16 %v1869_v8, %v1868_v62  ;;  %v1852_v28 = vld [vmem:[#allocation5 + $0x170] sm:$0xff] }
 0x3b2   : > { %4482 = vst [vmem:[#allocation22_spill] sm:$0xff] %v4024_v42  ;;  %v1388_v21 = vmul.f32 1.442695, %v1365_v29  ;;  %v4027_v33 = vpop.eup %2900  ;;  %v1661_v45 = vpop.xlane.xlu1 %1660  ;;  %1736 = vadd.xlane.f32.xlu1 %v4024_v42  ;;  %v1853_v29 = vld [vmem:[#allocation5 + $0x178] sm:$0xff]  ;;  %2791 = vmatpush3.bf16.msra.mxu1 %v4022_v55 }
 0x3b3   : > { %v1183_v36 = vpop.xlane.xlu0 %1182  ;;  %2910 = vpow2.f32 %v1548_v43  ;;  %v1685_v22 = vsub.f32 %v3848_v40, %v1661_v45  ;;  %1258 = vadd.xlane.f32.xlu0 %v4027_v33  ;;  %v4036_v39 = vpack.c.bf16 %v1853_v29, %v1852_v28  ;;  %2784 = vmatprep.subr.bf16.mxu1 %v4033_v6 }
 0x3b4   : > { %v1206_v41 = vsub.f32 %v3687_v48, %v1183_v36  ;;  %2912 = vpow2.f32 %v1388_v21 }
 0x3b5   : > { %v4038_v10 = vpop.eup %2902  ;;  %v1708_v42 = vmul.f32 1.442695, %v1685_v22 }
 0x3b6   : > { %v1230_v0 = vmul.f32 1.442695, %v1206_v41  ;;  %v4041_v40 = vpop.eup %2904  ;;  %v1503_v43 = vpop.xlane.xlu1 %1502  ;;  %1578 = vadd.xlane.f32.xlu1 %v4038_v10  ;;  %2792 = vmatpush3.bf16.msra.mxu1 %v4036_v39 }
 0x3b7   : > { %v1343_v48 = vpop.xlane.xlu0 %1342  ;;  %2914 = vpow2.f32 %v1708_v42  ;;  %v1526_v45 = vsub.f32 %v3690_v49, %v1503_v43  ;;  %1418 = vadd.xlane.f32.xlu0 %v4041_v40 }
 0x3b8   : > { %v1366_v21 = vsub.f32 %v3854_v54, %v1343_v48  ;;  %2916 = vpow2.f32 %v1230_v0 }
 0x3b9   : > { %v4048_v36 = vpop.eup %2906  ;;  %v1550_v62 = vmul.f32 1.442695, %v1526_v45 }
 0x3ba   : > { %v1390_v8 = vmul.f32 1.442695, %v1366_v21  ;;  %v4050_v22 = vpop.eup %2908  ;;  %v1663_v41 = vpop.xlane.xlu1 %1662  ;;  %1738 = vadd.xlane.f32.xlu1 %v4048_v36 }
 0x3bb   : > { %v1185_v28 = vpop.xlane.xlu0 %1184  ;;  %2918 = vpow2.f32 %v1550_v62  ;;  %v1686_v49 = vsub.f32 %v3860_v59, %v1663_v41  ;;  %1260 = vadd.xlane.f32.xlu0 %v4050_v22 }
 0x3bc   : > { %v1207_v54 = vsub.f32 %v3705_v57, %v1185_v28  ;;  %2920 = vpow2.f32 %v1390_v8 }
 0x3bd   : > { %v4056_v0 = vpop.eup %2910  ;;  %v1710_v42 = vmul.f32 1.442695, %v1686_v49 }
 0x3be   : > { %v1232_v29 = vmul.f32 1.442695, %v1207_v54  ;;  %v4058_v43 = vpop.eup %2912  ;;  %v1505_v48 = vpop.xlane.xlu1 %1504  ;;  %1580 = vadd.xlane.f32.xlu1 %v4056_v0 }
 0x3bf   : > { %v1345_v45 = vpop.xlane.xlu0 %1344  ;;  %2922 = vpow2.f32 %v1710_v42  ;;  %v1527_v21 = vsub.f32 %v3708_v60, %v1505_v48  ;;  %1420 = vadd.xlane.f32.xlu0 %v4058_v43 }
 0x3c0   : > { %v1367_v59 = vsub.f32 %v3711_v63, %v1345_v45  ;;  %2924 = vpow2.f32 %v1232_v29 }
 0x3c1   : > { %v4064_v57 = vpop.eup %2914  ;;  %v1552_v62 = vmul.f32 1.442695, %v1527_v21 }
 0x3c2   : > { %v1392_v8 = vmul.f32 1.442695, %v1367_v59  ;;  %v4066_v41 = vpop.eup %2916  ;;  %v1665_v28 = vpop.xlane.xlu1 %1664  ;;  %1740 = vadd.xlane.f32.xlu1 %v4064_v57 }
 0x3c3   : > { %v1187_v49 = vpop.xlane.xlu0 %1186  ;;  %2926 = vpow2.f32 %v1552_v62  ;;  %v1687_v54 = vsub.f32 %v3714_v27, %v1665_v28  ;;  %1262 = vadd.xlane.f32.xlu0 %v4066_v41 }
 0x3c4   : > { %v1208_v60 = vsub.f32 %v3725_v7, %v1187_v49  ;;  %2928 = vpow2.f32 %v1392_v8 }
 0x3c5   : > { %v4072_v63 = vpop.eup %2918  ;;  %v1712_v42 = vmul.f32 1.442695, %v1687_v54 }
 0x3c6   : > { %v1234_v29 = vmul.f32 1.442695, %v1208_v60  ;;  %v4074_v48 = vpop.eup %2920  ;;  %v1507_v45 = vpop.xlane.xlu1 %1506  ;;  %1582 = vadd.xlane.f32.xlu1 %v4072_v63 }
 0x3c7   : > { %v1347_v21 = vpop.xlane.xlu0 %1346  ;;  %2930 = vpow2.f32 %v1712_v42  ;;  %v1528_v59 = vsub.f32 %v3728_v11, %v1507_v45  ;;  %1422 = vadd.xlane.f32.xlu0 %v4074_v48 }
 0x3c8   : > { %v1368_v27 = vsub.f32 %v3731_v15, %v1347_v21  ;;  %2932 = vpow2.f32 %v1234_v29 }
 0x3c9   : > { %v4080_v7 = vpop.eup %2922  ;;  %v1554_v62 = vmul.f32 1.442695, %v1528_v59 }
 0x3ca   : > { %v1394_v8 = vmul.f32 1.442695, %v1368_v27  ;;  %v4082_v28 = vpop.eup %2924  ;;  %v1667_v49 = vpop.xlane.xlu1 %1666  ;;  %1742 = vadd.xlane.f32.xlu1 %v4080_v7 }
 0x3cb   : > { %v1189_v54 = vpop.xlane.xlu0 %1188  ;;  %2934 = vpow2.f32 %v1554_v62  ;;  %v1688_v60 = vsub.f32 %v3734_v17, %v1667_v49  ;;  %1264 = vadd.xlane.f32.xlu0 %v4082_v28 }
 0x3cc   : > { %v1209_v11 = vsub.f32 %v3745_v24, %v1189_v54  ;;  %2936 = vpow2.f32 %v1394_v8 }
 0x3cd   : > { %v4088_v15 = vpop.eup %2926  ;;  %v1714_v42 = vmul.f32 1.442695, %v1688_v60 }
 0x3ce   : > { %v1236_v29 = vmul.f32 1.442695, %v1209_v11  ;;  %v4090_v45 = vpop.eup %2928  ;;  %v1509_v21 = vpop.xlane.xlu1 %1508  ;;  %1584 = vadd.xlane.f32.xlu1 %v4088_v15 }
 0x3cf   : > { %v1349_v59 = vpop.xlane.xlu0 %1348  ;;  %2938 = vpow2.f32 %v1714_v42  ;;  %v1529_v27 = vsub.f32 %v3748_v25, %v1509_v21  ;;  %1424 = vadd.xlane.f32.xlu0 %v4090_v45 }
 0x3d0   : > { %v1369_v17 = vsub.f32 %v3751_v52, %v1349_v59  ;;  %2940 = vpow2.f32 %v1236_v29 }
 0x3d1   : > { %v4096_v24 = vpop.eup %2930  ;;  %v1556_v62 = vmul.f32 1.442695, %v1529_v27 }
 0x3d2   : > { %v1396_v8 = vmul.f32 1.442695, %v1369_v17  ;;  %v4098_v49 = vpop.eup %2932  ;;  %v1669_v54 = vpop.xlane.xlu1 %1668  ;;  %1744 = vadd.xlane.f32.xlu1 %v4096_v24 }
 0x3d3   : > { %v1191_v60 = vpop.xlane.xlu0 %1190  ;;  %2942 = vpow2.f32 %v1556_v62  ;;  %v1689_v11 = vsub.f32 %v3754_v53, %v1669_v54  ;;  %1266 = vadd.xlane.f32.xlu0 %v4098_v49 }
 0x3d4   : > { %v1210_v25 = vsub.f32 %v3767_v2, %v1191_v60  ;;  %2944 = vpow2.f32 %v1396_v8 }
 0x3d5   : > { %v4104_v52 = vpop.eup %2934  ;;  %v1716_v42 = vmul.f32 1.442695, %v1689_v11 }
 0x3d6   : > { %v1238_v29 = vmul.f32 1.442695, %v1210_v25  ;;  %v4106_v21 = vpop.eup %2936  ;;  %v1511_v59 = vpop.xlane.xlu1 %1510  ;;  %1586 = vadd.xlane.f32.xlu1 %v4104_v52 }
 0x3d7   : > { %v1351_v27 = vpop.xlane.xlu0 %1350  ;;  %2946 = vpow2.f32 %v1716_v42  ;;  %v1530_v17 = vsub.f32 %v3770_v4, %v1511_v59  ;;  %1426 = vadd.xlane.f32.xlu0 %v4106_v21 }
 0x3d8   : > { %v1370_v53 = vsub.f32 %v3773_v18, %v1351_v27  ;;  %2948 = vpow2.f32 %v1238_v29 }
 0x3d9   : > { %v4112_v2 = vpop.eup %2938  ;;  %v1558_v62 = vmul.f32 1.442695, %v1530_v17 }
 0x3da   : > { %v1398_v8 = vmul.f32 1.442695, %v1370_v53  ;;  %v4114_v54 = vpop.eup %2940  ;;  %v1671_v60 = vpop.xlane.xlu1 %1670  ;;  %1746 = vadd.xlane.f32.xlu1 %v4112_v2 }
 0x3db   : > { %v1193_v11 = vpop.xlane.xlu0 %1192  ;;  %2950 = vpow2.f32 %v1558_v62  ;;  %v1690_v25 = vsub.f32 %v3776_v20, %v1671_v60  ;;  %1268 = vadd.xlane.f32.xlu0 %v4114_v54 }
 0x3dc   : > { %v1211_v4 = vsub.f32 %v3789_v26, %v1193_v11  ;;  %2952 = vpow2.f32 %v1398_v8 }
 0x3dd   : > { %v4120_v18 = vpop.eup %2942  ;;  %v1718_v42 = vmul.f32 1.442695, %v1690_v25 }
 0x3de   : > { %v1240_v29 = vmul.f32 1.442695, %v1211_v4  ;;  %v4122_v59 = vpop.eup %2944  ;;  %v1513_v27 = vpop.xlane.xlu1 %1512  ;;  %1588 = vadd.xlane.f32.xlu1 %v4120_v18 }
 0x3df   : > { %v1353_v17 = vpop.xlane.xlu0 %1352  ;;  %2954 = vpow2.f32 %v1718_v42  ;;  %v1531_v53 = vsub.f32 %v3792_v30, %v1513_v27  ;;  %1428 = vadd.xlane.f32.xlu0 %v4122_v59 }
 0x3e0   : > { %v1371_v20 = vsub.f32 %v3795_v34, %v1353_v17  ;;  %2956 = vpow2.f32 %v1240_v29 }
 0x3e1   : > { %v4128_v26 = vpop.eup %2946  ;;  %v1560_v62 = vmul.f32 1.442695, %v1531_v53 }
 0x3e2   : > { %v1400_v8 = vmul.f32 1.442695, %v1371_v20  ;;  %v4130_v60 = vpop.eup %2948  ;;  %v1673_v11 = vpop.xlane.xlu1 %1672  ;;  %1748 = vadd.xlane.f32.xlu1 %v4128_v26 }
 0x3e3   : > { %4483 = vst [vmem:[#allocation39_spill] sm:$0xff] %v4130_v60  ;;  %v1195_v25 = vpop.xlane.xlu0 %1194  ;;  %2958 = vpow2.f32 %v1560_v62  ;;  %v1691_v4 = vsub.f32 %v3798_v47, %v1673_v11  ;;  %1270 = vadd.xlane.f32.xlu0 %v4130_v60 }
 0x3e4   : > { %v1212_v30 = vsub.f32 %v3811_v12, %v1195_v25  ;;  %2960 = vpow2.f32 %v1400_v8 }
 0x3e5   : > { %v4136_v34 = vpop.eup %2950  ;;  %v1720_v42 = vmul.f32 1.442695, %v1691_v4  ;;  %v4487_v4 = vld [vmem:[#allocation23_spill] sm:$0xff] }
 0x3e6   : > { %4484 = vst [vmem:[#allocation40_spill] sm:$0xff] %v4136_v34  ;;  %v1242_v29 = vmul.f32 1.442695, %v1212_v30  ;;  %v4138_v27 = vpop.eup %2952  ;;  %v1515_v17 = vpop.xlane.xlu1 %1514  ;;  %1590 = vadd.xlane.f32.xlu1 %v4136_v34 }
 0x3e7   : > { %4485 = vst [vmem:[#allocation41_spill] sm:$0xff] %v4138_v27  ;;  %v1355_v53 = vpop.xlane.xlu0 %1354  ;;  %2962 = vpow2.f32 %v1720_v42  ;;  %1430 = vadd.xlane.f32.xlu0 %v4138_v27  ;;  %v1532_v25 = vsub.f32 %v3814_v14, %v1515_v17  ;;  %v4488_v42 = vld [vmem:[#allocation24_spill] sm:$0xff]  ;;  %v4490_v14 = vld [vmem:[#allocation26_spill] sm:$0xff] }
 0x3e8   : > { %v1372_v47 = vsub.f32 %v3817_v46, %v1355_v53  ;;  %2964 = vpow2.f32 %v1242_v29 }
 0x3e9   : > { %v4143_v20 = vpop.eup %2954  ;;  %v1562_v60 = vmul.f32 1.442695, %v1532_v25 }
 0x3ea   : > { %4486 = vst [vmem:[#allocation42_spill] sm:$0xff] %v4143_v20  ;;  %v1402_v12 = vmul.f32 1.442695, %v1372_v47  ;;  %v4145_v62 = vpop.eup %2956  ;;  %v1675_v8 = vpop.xlane.xlu1 %1674  ;;  %1750 = vadd.xlane.f32.xlu1 %v4143_v20 }
 0x3eb   : > { %v1197_v11 = vpop.xlane.xlu0 %1196  ;;  %v1692_v30 = vsub.f32 %v4487_v4, %v1675_v8  ;;  %1272 = vadd.xlane.f32.xlu0 %v4145_v62  ;;  %v4491_v8 = vld [vmem:[#allocation14_spill] sm:$0xff] }
 0x3ec   : > { %v1213_v34 = vsub.f32 %v4488_v42, %v1197_v11  ;;  %2966 = vpow2.f32 %v1402_v12  ;;  %v1679_v11 = vsub.f32 %v4491_v8, %v3909_v61  ;;  %v4493_v42 = vld [vmem:[#allocation25_spill] sm:$0xff] }
 0x3ed   : > { %v4152_v46 = vpop.eup %2958  ;;  %v1722_v29 = vmul.f32 1.442695, %v1692_v30 }
 0x3ee   : > { %4489 = vst [vmem:[#allocation23_spill] sm:$0xff] %v4152_v46  ;;  %v1244_v53 = vmul.f32 1.442695, %v1213_v34  ;;  %v4154_v47 = vpop.eup %2960  ;;  %v1517_v27 = vpop.xlane.xlu1 %1516  ;;  %1592 = vadd.xlane.f32.xlu1 %v4152_v46  ;;  %v1696_v61 = vmul.f32 1.442695, %v1679_v11 }
 0x3ef   : > { %v1357_v20 = vpop.xlane.xlu0 %1356  ;;  %2968 = vpow2.f32 %v1722_v29  ;;  %1432 = vadd.xlane.f32.xlu0 %v4154_v47  ;;  %v1533_v25 = vsub.f32 %v4493_v42, %v1517_v27  ;;  %v4494_v29 = vld [vmem:[#allocation27_spill] sm:$0xff] }
 0x3f0   : > { %v1373_v17 = vsub.f32 %v4490_v14, %v1357_v20  ;;  %2970 = vpow2.f32 %v1244_v53  ;;  %v4495_v20 = vld [vmem:[#allocation13_spill] sm:$0xff] }
 0x3f1   : > { %v4161_v12 = vpop.eup %2962  ;;  %2972 = vpow2.f32 %v1562_v60  ;;  %v1519_v14 = vsub.f32 %v4495_v20, %v3901_v50  ;;  %v4496_v60 = vld [vmem:[#allocation16_spill] sm:$0xff]  ;;  %v4498_v50 = vld [vmem:[#allocation15_spill] sm:$0xff] }
 0x3f2   : > { %4492 = vst [vmem:[#allocation24_spill] sm:$0xff] %v4161_v12  ;;  %v1404_v4 = vmul.f32 1.442695, %v1373_v17  ;;  %v4163_v34 = vpop.eup %2964  ;;  %v1677_v30 = vpop.xlane.xlu1 %1676  ;;  %1752 = vadd.xlane.f32.xlu1 %v4161_v12  ;;  %v1564_v17 = vmul.f32 1.442695, %v1533_v25  ;;  %v1680_v27 = vsub.f32 %v4496_v60, %v3932_v32 }
 0x3f3   : > { %v1693_v46 = vsub.f32 %v4494_v29, %v1677_v30  ;;  %1274 = vadd.xlane.f32.xlu0 %v4163_v34  ;;  %v1536_v12 = vmul.f32 1.442695, %v1519_v14 }
 0x3f4   : > { %2974 = vpow2.f32 %v1404_v4  ;;  %v1698_v11 = vmul.f32 1.442695, %v1680_v27 }
 0x3f5   : > { %v1724_v53 = vmul.f32 1.442695, %v1693_v46  ;;  %v1520_v46 = vsub.f32 %v4498_v50, %v3915_v9 }
 0x3f6   : > { %v4171_v8 = vpop.eup %2966 }
 0x3f7   : > { %2976 = vpow2.f32 %v1724_v53  ;;  %1434 = vadd.xlane.f32.xlu0 %v4171_v8  ;;  %v1538_v32 = vmul.f32 1.442695, %v1520_v46 }
 0x3f8   : > { %2978 = vpow2.f32 %v1696_v61 }
 0x3f9   : > { %v4176_v30 = vpop.eup %2968  ;;  %2980 = vpow2.f32 %v1564_v17 }
 0x3fa   : > { %v4178_v42 = vpop.eup %2970  ;;  %1754 = vadd.xlane.f32.xlu1 %v4176_v30  ;;  %2982 = vpow2.f32 %v1536_v12 }
 0x3fb   : > { %4497 = vst [vmem:[#allocation26_spill] sm:$0xff] %v4178_v42  ;;  %1276 = vadd.xlane.f32.xlu0 %v4178_v42  ;;  %v4184_v4 = vpop.eup %2972  ;;  %2984 = vpow2.f32 %v1698_v11 }
 0x3fc   : > { %2986 = vpow2.f32 %v1538_v32 }
 0x3fe   : > { %v4186_v25 = vpop.eup %2974  ;;  %1594 = vadd.xlane.f32.xlu1 %v4184_v4 }
 0x3ff   : > { %4499 = vst [vmem:[#allocation14_spill] sm:$0xff] %v4186_v25  ;;  %1436 = vadd.xlane.f32.xlu0 %v4186_v25 }
 0x401   : > { %v4190_v29 = vpop.eup %2976 }
 0x402   : > { %4500 = vst [vmem:[#allocation25_spill] sm:$0xff] %v4190_v29  ;;  %v4192_v20 = vpop.eup %2978  ;;  %1756 = vadd.xlane.f32.xlu1 %v4190_v29 }
 0x403   : > { %4501 = vst [vmem:[#allocation27_spill] sm:$0xff] %v4192_v20  ;;  %1728 = vadd.xlane.f32.xlu0 %v4192_v20  ;;  %v4196_v9 = vpop.eup %2980 }
 0x404   : > { %4502 = vst [vmem:[#allocation13_spill] sm:$0xff] %v4196_v9  ;;  %v4198_v12 = vpop.eup %2982 }
 0x405   : > { %4503 = vst [vmem:[#allocation16_spill] sm:$0xff] %v4198_v12  ;;  %v4202_v14 = vpop.eup %2984 }
 0x406   : > { %1596 = vadd.xlane.f32.xlu1 %v4196_v9  ;;  %4504 = vst [vmem:[#allocation15_spill] sm:$0xff] %v4202_v14  ;;  %v4205_v61 = vpop.eup %2986 }
 0x407   : > { %1568 = vadd.xlane.f32.xlu0 %v4198_v12  ;;  %4505 = vst [vmem:[#allocation43_spill] sm:$0xff] %v4205_v61 }
 0x40b   : > { %1730 = vadd.xlane.f32.xlu0 %v4202_v14 }
 0x40f   : > { %1570 = vadd.xlane.f32.xlu0 %v4205_v61  ;;  %v1247_v53 = vpop.xlane.xlu1 %1246 }
 0x410   : > { %2988 = vrcp.f32 %v1247_v53 }
 0x413   : > { %v1249_v60 = vpop.xlane.xlu1 %1248 }
 0x414   : > { %v4208_v17 = vpop.xlane.xlu0 %1566 }
 0x418   : > { %v1407_v27 = vpop.xlane.xlu0 %1406 }
 0x419   : > { %2990 = vrcp.f32 %v1407_v27 }
 0x41a   : > { %2992 = vrcp.f32 %v1249_v60  ;;  %v2989_v32 = vpop.eup %2988 }
 0x41b   : > { %v1251_v50 = vpop.xlane.xlu1 %1250  ;;  %v1294_v9 = vmul.f32 %v2989_v32, %v3898_v3 }
 0x41c   : > { %v4210_v46 = vpop.xlane.xlu0 %1726 }
 0x41d   : > { %v1310_v25 = vmax.f32 %v1294_v9, 0.001 }
 0x41f   : > { %v1253_v11 = vpop.xlane.xlu1 %1252 }
 0x420   : > { %v1409_v12 = vpop.xlane.xlu0 %1408 }
 0x421   : > { %2994 = vrcp.f32 %v1409_v12 }
 0x423   : > { %v2991_v14 = vpop.eup %2990  ;;  %v1573_v20 = vpop.xlane.xlu1 %1572 }
 0x424   : > { %v1454_v61 = vmul.f32 %v2991_v14, %v3913_v58  ;;  %2996 = vrcp.f32 %v1573_v20  ;;  %v2993_v42 = vpop.eup %2992  ;;  %v4506_v14 = vld [vmem:[#allocation35_spill] sm:$0xff] }
 0x425   : > { %v1295_v12 = vmul.f32 %v2993_v42, %v3904_v13  ;;  %v4508_v13 = vld [vmem:[#allocation32_spill] sm:$0xff] }
 0x426   : > { %v1470_v29 = vmax.f32 %v1454_v61, 0.001 }
 0x427   : > { %v1733_v53 = vpop.xlane.xlu1 %1732 }
 0x428   : > { %2998 = vrcp.f32 %v1733_v53  ;;  %1934 = vmatprep.mubr.f32.mxu0 %v1470_v29  ;;  %v1311_v29 = vmax.f32 %v1295_v12, 0.001 }
 0x429   : > { %1935 = vmatmul.mubr.f32.vlgmr.msra.gmra.mrb[48].mxu0 %v1310_v25  ;;  %3000 = vrcp.f32 %v1251_v50  ;;  %v4507_v25 = vld [vmem:[#allocation37_spill] sm:$0xff] }
 0x42a   : > { %2748 = vmatpush3.bf16.msra.mxu0 %v3945_v37 }
 0x42b   : > { %v2995_v60 = vpop.eup %2994  ;;  %v1255_v27 = vpop.xlane.xlu1 %1254  ;;  %2750 = vmatprep.subr.bf16.mxu0 %v3952_v38 }
 0x42c   : > { %v1411_v3 = vpop.xlane.xlu0 %1410  ;;  %v1455_v58 = vmul.f32 %v2995_v60, %v3929_v16  ;;  %v4509_v16 = vld [vmem:[#allocation33_spill] sm:$0xff] }
 0x42d   : > { %3002 = vrcp.f32 %v1411_v3 }
 0x42e   : > { %v1471_v20 = vmax.f32 %v1455_v58, 0.001  ;;  %2752 = vmatpush3.bf16.msra.mxu0 %v4506_v14  ;;  %v2997_v9 = vpop.eup %2996  ;;  %v4510_v58 = vld [vmem:[#allocation29_spill] sm:$0xff]  ;;  %v4511_v14 = vld [vmem:[#allocation36_spill] sm:$0xff] }
 0x42f   : > { %v1575_v61 = vpop.xlane.xlu1 %1574  ;;  %2754 = vmatprep.subr.bf16.mxu0 %v4507_v25  ;;  %v1617_v42 = vmul.f32 %v2997_v9, %v4508_v13 }
 0x430   : > { %1939 = vmatprep.mubr.f32.mxu0 %v1471_v20  ;;  %3004 = vrcp.f32 %v1575_v61 }
 0x431   : > { %1940 = vmatmul.mubr.f32.gmra.mrb[50].mxu0 %v1311_v29  ;;  %3006 = vrcp.f32 %v1253_v11  ;;  %v1633_v12 = vmax.f32 %v1617_v42, 0.001 }
 0x432   : > { %v2999_v37 = vpop.eup %2998  ;;  %2756 = vmatpush3.bf16.msra.mxu0 %v3970_v19 }
 0x433   : > { %v1735_v38 = vpop.xlane.xlu1 %1734  ;;  %v1777_v50 = vmul.f32 %v2999_v37, %v4509_v16  ;;  %2758 = vmatprep.subr.bf16.mxu0 %v3977_v51  ;;  %v3001_v32 = vpop.eup %3000  ;;  %v4512_v37 = vld [vmem:[#allocation38_spill] sm:$0xff]  ;;  %v4513_v16 = vld [vmem:[#allocation31_spill] sm:$0xff] }
 0x434   : > { %3008 = vrcp.f32 %v1735_v38  ;;  %v1413_v53 = vpop.xlane.xlu0 %1412  ;;  %v1296_v20 = vmul.f32 %v3001_v32, %v4510_v58 }
 0x435   : > { %3010 = vrcp.f32 %v1413_v53  ;;  %v1793_v60 = vmax.f32 %v1777_v50, 0.001  ;;  %v4514_v53 = vld [vmem:[#allocation17_spill] sm:$0xff] }
 0x436   : > { %3012 = vrcp.f32 %v1255_v27  ;;  %2760 = vmatpush3.bf16.msra.mxu0 %v3981_v23  ;;  %v1312_v29 = vmax.f32 %v1296_v20, 0.001 }
 0x437   : > { %v3003_v3 = vpop.eup %3002  ;;  %2094 = vmatprep.mubr.f32.mxu1 %v1793_v60  ;;  %v1257_v11 = vpop.xlane.xlu1 %1256  ;;  %2762 = vmatprep.subr.bf16.mxu0 %v3990_v5 }
 0x438   : > { %v1415_v19 = vpop.xlane.xlu0 %1414  ;;  %2095 = vmatmul.mubr.f32.vlgmr.msra.gmra.mrb[48].mxu1 %v1633_v12  ;;  %v1456_v51 = vmul.f32 %v3003_v3, %v4511_v14 }
 0x439   : > { %3014 = vrcp.f32 %v1415_v19 }
 0x43a   : > { %3016 = vrcp.f32 %v1257_v11  ;;  %v1472_v9 = vmax.f32 %v1456_v51, 0.001  ;;  %2764 = vmatpush3.bf16.msra.mxu0 %v3993_v1  ;;  %v3005_v27 = vpop.eup %3004  ;;  %v4516_v51 = vld [vmem:[#allocation19_spill] sm:$0xff] }
 0x43b   : > { %v1577_v61 = vpop.xlane.xlu1 %1576  ;;  %2766 = vmatprep.subr.bf16.mxu0 %v4005_v56  ;;  %v3007_v23 = vpop.eup %3006  ;;  %v1618_v13 = vmul.f32 %v3005_v27, %v4512_v37  ;;  %v4518_v37 = vld [vmem:[#allocation21_spill] sm:$0xff] }
 0x43c   : > { %3018 = vrcp.f32 %v1577_v61  ;;  %1944 = vmatprep.mubr.f32.mxu0 %v1472_v9  ;;  %v1417_v25 = vpop.xlane.xlu0 %1416  ;;  %v1297_v50 = vmul.f32 %v3007_v23, %v4513_v16 }
 0x43d   : > { %3020 = vrcp.f32 %v1417_v25  ;;  %1945 = vmatmul.mubr.f32.gmra.mrb[52].mxu0 %v1312_v29  ;;  %v1634_v11 = vmax.f32 %v1618_v13, 0.001  ;;  %v4517_v25 = vld [vmem:[#allocation18_spill] sm:$0xff] }
 0x43e   : > { %v3009_v5 = vpop.eup %3008  ;;  %2768 = vmatpush3.bf16.msra.mxu0 %v4008_v35  ;;  %v1313_v20 = vmax.f32 %v1297_v50, 0.001 }
 0x43f   : > { %v3011_v42 = vpop.eup %3010  ;;  %v1737_v38 = vpop.xlane.xlu1 %1736  ;;  %v1778_v1 = vmul.f32 %v3009_v5, %v3979_v44  ;;  %2770 = vmatprep.subr.bf16.mxu0 %v4019_v31  ;;  %v4515_v44 = vld [vmem:[#allocation34_spill] sm:$0xff] }
 0x440   : > { %v3013_v56 = vpop.eup %3012  ;;  %3022 = vrcp.f32 %v1737_v38  ;;  %v1259_v32 = vpop.xlane.xlu0 %1258  ;;  %v1457_v60 = vmul.f32 %v3011_v42, %v4514_v53 }
 0x441   : > { %v1794_v12 = vmax.f32 %v1778_v1, 0.001  ;;  %3024 = vrcp.f32 %v1259_v32  ;;  %v1298_v19 = vmul.f32 %v3013_v56, %v4515_v44  ;;  %v4519_v1 = vld [vmem:[#allocation20_spill] sm:$0xff]  ;;  %v4520_v32 = vld [vmem:[#allocation22_spill] sm:$0xff] }
 0x442   : > { %v1473_v3 = vmax.f32 %v1457_v60, 0.001  ;;  %2772 = vmatpush3.bf16.msra.mxu0 %v4022_v55 }
 0x443   : > { %v3015_v35 = vpop.eup %3014  ;;  %2099 = vmatprep.mubr.f32.mxu1 %v1794_v12  ;;  %v1579_v58 = vpop.xlane.xlu1 %1578  ;;  %2774 = vmatprep.subr.bf16.mxu0 %v4033_v6  ;;  %v1314_v23 = vmax.f32 %v1298_v19, 0.001 }
 0x444   : > { %v3017_v31 = vpop.eup %3016  ;;  %3026 = vrcp.f32 %v1579_v58  ;;  %1949 = vmatprep.mubr.f32.mxu0 %v1473_v3  ;;  %v1419_v14 = vpop.xlane.xlu0 %1418  ;;  %2100 = vmatmul.mubr.f32.gmra.mrb[50].mxu1 %v1634_v11  ;;  %v1458_v9 = vmul.f32 %v3015_v35, %v4516_v51 }
 0x445   : > { %3028 = vrcp.f32 %v1419_v14  ;;  %1950 = vmatmul.mubr.f32.gmra.mrb[54].mxu0 %v1313_v20  ;;  %v1299_v5 = vmul.f32 %v3017_v31, %v4517_v25 }
 0x446   : > { %v3019_v27 = vpop.eup %3018  ;;  %v1474_v61 = vmax.f32 %v1458_v9, 0.001  ;;  %2776 = vmatpush3.bf16.msra.mxu0 %v4036_v39 }
 0x447   : > { %v3021_v55 = vpop.eup %3020  ;;  %v1739_v29 = vpop.xlane.xlu1 %1738  ;;  %v1619_v16 = vmul.f32 %v3019_v27, %v4519_v1  ;;  %v1315_v56 = vmax.f32 %v1299_v5, 0.001 }
 0x448   : > { %3030 = vrcp.f32 %v1739_v29  ;;  %1954 = vmatprep.mubr.f32.mxu0 %v1474_v61  ;;  %v1261_v6 = vpop.xlane.xlu0 %1260  ;;  %v1459_v13 = vmul.f32 %v3021_v55, %v4518_v37 }
 0x449   : > { %1955 = vmatmul.mubr.f32.gmra.mrb[56].mxu0 %v1314_v23  ;;  %3032 = vrcp.f32 %v1261_v6  ;;  %v1635_v11 = vmax.f32 %v1619_v16, 0.001 }
 0x44a   : > { %v3023_v42 = vpop.eup %3022  ;;  %v1475_v38 = vmax.f32 %v1459_v13, 0.001 }
 0x44b   : > { %v1581_v50 = vpop.xlane.xlu1 %1580  ;;  %v1779_v39 = vmul.f32 %v3023_v42, %v4520_v32  ;;  %v3025_v53 = vpop.eup %3024 }
 0x44c   : > { %3034 = vrcp.f32 %v1581_v50  ;;  %1959 = vmatprep.mubr.f32.mxu0 %v1475_v38  ;;  %v1421_v60 = vpop.xlane.xlu0 %1420  ;;  %v1300_v20 = vmul.f32 %v3025_v53, %v4027_v33 }
 0x44d   : > { %3036 = vrcp.f32 %v1421_v60  ;;  %1960 = vmatmul.mubr.f32.gmra.mrb[58].mxu0 %v1315_v56  ;;  %v1795_v12 = vmax.f32 %v1779_v39, 0.001 }
 0x44e   : > { %v3027_v3 = vpop.eup %3026  ;;  %v1316_v27 = vmax.f32 %v1300_v20, 0.001 }
 0x44f   : > { %v3029_v35 = vpop.eup %3028  ;;  %2104 = vmatprep.mubr.f32.mxu1 %v1795_v12  ;;  %v1741_v58 = vpop.xlane.xlu1 %1740  ;;  %v1620_v51 = vmul.f32 %v3027_v3, %v4038_v10 }
 0x450   : > { %3038 = vrcp.f32 %v1741_v58  ;;  %v1263_v44 = vpop.xlane.xlu0 %1262  ;;  %2105 = vmatmul.mubr.f32.gmra.mrb[52].mxu1 %v1635_v11  ;;  %v1460_v19 = vmul.f32 %v3029_v35, %v4041_v40 }
 0x451   : > { %3040 = vrcp.f32 %v1263_v44  ;;  %v1636_v25 = vmax.f32 %v1620_v51, 0.001 }
 0x452   : > { %v3031_v31 = vpop.eup %3030  ;;  %v1476_v14 = vmax.f32 %v1460_v19, 0.001 }
 0x453   : > { %v1583_v9 = vpop.xlane.xlu1 %1582  ;;  %v1780_v61 = vmul.f32 %v3031_v31, %v4048_v36  ;;  %v3033_v55 = vpop.eup %3032 }
 0x454   : > { %3042 = vrcp.f32 %v1583_v9  ;;  %1964 = vmatprep.mubr.f32.mxu0 %v1476_v14  ;;  %v1423_v29 = vpop.xlane.xlu0 %1422  ;;  %v1301_v6 = vmul.f32 %v3033_v55, %v4050_v22 }
 0x455   : > { %3044 = vrcp.f32 %v1423_v29  ;;  %1965 = vmatmul.mubr.f32.gmra.mrb[60].mxu0 %v1316_v27  ;;  %v1796_v33 = vmax.f32 %v1780_v61, 0.001 }
 0x456   : > { %v3035_v23 = vpop.eup %3034  ;;  %v1317_v1 = vmax.f32 %v1301_v6, 0.001 }
 0x457   : > { %v3037_v5 = vpop.eup %3036  ;;  %2109 = vmatprep.mubr.f32.mxu1 %v1796_v33  ;;  %v1743_v40 = vpop.xlane.xlu1 %1742  ;;  %v1621_v42 = vmul.f32 %v3035_v23, %v4056_v0 }
 0x458   : > { %3046 = vrcp.f32 %v1743_v40  ;;  %v1265_v10 = vpop.xlane.xlu0 %1264  ;;  %2110 = vmatmul.mubr.f32.gmra.mrb[54].mxu1 %v1636_v25  ;;  %v1461_v37 = vmul.f32 %v3037_v5, %v4058_v43 }
 0x459   : > { %3048 = vrcp.f32 %v1265_v10  ;;  %v1637_v39 = vmax.f32 %v1621_v42, 0.001 }
 0x45a   : > { %v3039_v36 = vpop.eup %3038  ;;  %v1477_v13 = vmax.f32 %v1461_v37, 0.001 }
 0x45b   : > { %v1585_v38 = vpop.xlane.xlu1 %1584  ;;  %v1781_v16 = vmul.f32 %v3039_v36, %v4064_v57  ;;  %v3041_v50 = vpop.eup %3040 }
 0x45c   : > { %3050 = vrcp.f32 %v1585_v38  ;;  %1969 = vmatprep.mubr.f32.mxu0 %v1477_v13  ;;  %v1425_v56 = vpop.xlane.xlu0 %1424  ;;  %v1302_v60 = vmul.f32 %v3041_v50, %v4066_v41 }
 0x45d   : > { %3052 = vrcp.f32 %v1425_v56  ;;  %1970 = vmatmul.mubr.f32.gmra.mrb[62].mxu0 %v1317_v1  ;;  %v1797_v22 = vmax.f32 %v1781_v16, 0.001 }
 0x45e   : > { %v3043_v32 = vpop.eup %3042  ;;  %v1318_v58 = vmax.f32 %v1302_v60, 0.001 }
 0x45f   : > { %v3045_v53 = vpop.eup %3044  ;;  %2114 = vmatprep.mubr.f32.mxu1 %v1797_v22  ;;  %v1745_v43 = vpop.xlane.xlu1 %1744  ;;  %v1622_v11 = vmul.f32 %v3043_v32, %v4072_v63 }
 0x460   : > { %3054 = vrcp.f32 %v1745_v43  ;;  %v1267_v0 = vpop.xlane.xlu0 %1266  ;;  %2115 = vmatmul.mubr.f32.gmra.mrb[56].mxu1 %v1637_v39  ;;  %v1462_v12 = vmul.f32 %v3045_v53, %v4074_v48 }
 0x461   : > { %3056 = vrcp.f32 %v1267_v0  ;;  %v1638_v14 = vmax.f32 %v1622_v11, 0.001 }
 0x462   : > { %v3047_v57 = vpop.eup %3046  ;;  %v1478_v3 = vmax.f32 %v1462_v12, 0.001 }
 0x463   : > { %v1587_v35 = vpop.xlane.xlu1 %1586  ;;  %v1782_v20 = vmul.f32 %v3047_v57, %v4080_v7  ;;  %v3049_v44 = vpop.eup %3048 }
 0x464   : > { %3058 = vrcp.f32 %v1587_v35  ;;  %1974 = vmatprep.mubr.f32.mxu0 %v1478_v3  ;;  %v1427_v19 = vpop.xlane.xlu0 %1426  ;;  %v1303_v9 = vmul.f32 %v3049_v44, %v4082_v28 }
 0x465   : > { %3060 = vrcp.f32 %v1427_v19  ;;  %1975 = vmatmul.mubr.f32.gmra.mrb[64].mxu0 %v1318_v58  ;;  %v1798_v41 = vmax.f32 %v1782_v20, 0.001  ;;  %v4521_v19 = vld [vmem:[#allocation39_spill] sm:$0xff] }
 0x466   : > { %v3051_v31 = vpop.eup %3050  ;;  %v1319_v33 = vmax.f32 %v1303_v9, 0.001 }
 0x467   : > { %v3053_v51 = vpop.eup %3052  ;;  %2119 = vmatprep.mubr.f32.mxu1 %v1798_v41  ;;  %v1747_v48 = vpop.xlane.xlu1 %1746  ;;  %v1623_v55 = vmul.f32 %v3051_v31, %v4088_v15  ;;  %v4522_v31 = vld [vmem:[#allocation41_spill] sm:$0xff] }
 0x468   : > { %3062 = vrcp.f32 %v1747_v48  ;;  %v1269_v63 = vpop.xlane.xlu0 %1268  ;;  %2120 = vmatmul.mubr.f32.gmra.mrb[58].mxu1 %v1638_v14  ;;  %v1463_v27 = vmul.f32 %v3053_v51, %v4090_v45  ;;  %v4523_v48 = vld [vmem:[#allocation40_spill] sm:$0xff] }
 0x469   : > { %3064 = vrcp.f32 %v1269_v63  ;;  %v1639_v6 = vmax.f32 %v1623_v55, 0.001 }
 0x46a   : > { %v3055_v7 = vpop.eup %3054  ;;  %v1479_v61 = vmax.f32 %v1463_v27, 0.001  ;;  %v4524_v27 = vld [vmem:[#allocation42_spill] sm:$0xff] }
 0x46b   : > { %v1589_v29 = vpop.xlane.xlu1 %1588  ;;  %v1783_v23 = vmul.f32 %v3055_v7, %v4096_v24  ;;  %v3057_v25 = vpop.eup %3056 }
 0x46c   : > { %3066 = vrcp.f32 %v1589_v29  ;;  %1979 = vmatprep.mubr.f32.mxu0 %v1479_v61  ;;  %v1429_v5 = vpop.xlane.xlu0 %1428  ;;  %v1304_v37 = vmul.f32 %v3057_v25, %v4098_v49 }
 0x46d   : > { %3068 = vrcp.f32 %v1429_v5  ;;  %1980 = vmatmul.mubr.f32.gmra.mrb[66].mxu0 %v1319_v33  ;;  %v1799_v28 = vmax.f32 %v1783_v23, 0.001 }
 0x46e   : > { %v3059_v40 = vpop.eup %3058  ;;  %v1320_v1 = vmax.f32 %v1304_v37, 0.001  ;;  %v4525_v37 = vld [vmem:[#allocation23_spill] sm:$0xff] }
 0x46f   : > { %v3061_v10 = vpop.eup %3060  ;;  %2124 = vmatprep.mubr.f32.mxu1 %v1799_v28  ;;  %v1749_v45 = vpop.xlane.xlu1 %1748  ;;  %v1624_v42 = vmul.f32 %v3059_v40, %v4104_v52 }
 0x470   : > { %3070 = vrcp.f32 %v1749_v45  ;;  %v1271_v15 = vpop.xlane.xlu0 %1270  ;;  %2125 = vmatmul.mubr.f32.gmra.mrb[60].mxu1 %v1639_v6  ;;  %v1464_v36 = vmul.f32 %v3061_v10, %v4106_v21 }
 0x471   : > { %3072 = vrcp.f32 %v1271_v15  ;;  %v1640_v32 = vmax.f32 %v1624_v42, 0.001 }
 0x472   : > { %v3063_v24 = vpop.eup %3062  ;;  %v1480_v13 = vmax.f32 %v1464_v36, 0.001 }
 0x473   : > { %v1591_v38 = vpop.xlane.xlu1 %1590  ;;  %v1784_v16 = vmul.f32 %v3063_v24, %v4112_v2  ;;  %v3065_v50 = vpop.eup %3064 }
 0x474   : > { %3074 = vrcp.f32 %v1591_v38  ;;  %1984 = vmatprep.mubr.f32.mxu0 %v1480_v13  ;;  %v1431_v56 = vpop.xlane.xlu0 %1430  ;;  %v1305_v53 = vmul.f32 %v3065_v50, %v4114_v54  ;;  %v4526_v13 = vld [vmem:[#allocation24_spill] sm:$0xff] }
 0x475   : > { %3076 = vrcp.f32 %v1431_v56  ;;  %1985 = vmatmul.mubr.f32.gmra.mrb[68].mxu0 %v1320_v1  ;;  %v1800_v49 = vmax.f32 %v1784_v16, 0.001 }
 0x476   : > { %v3067_v22 = vpop.eup %3066  ;;  %v1321_v57 = vmax.f32 %v1305_v53, 0.001 }
 0x477   : > { %v3069_v39 = vpop.eup %3068  ;;  %2129 = vmatprep.mubr.f32.mxu1 %v1800_v49  ;;  %v1751_v21 = vpop.xlane.xlu1 %1750  ;;  %v1625_v0 = vmul.f32 %v3067_v22, %v4120_v18 }
 0x478   : > { %3078 = vrcp.f32 %v1751_v21  ;;  %v1273_v52 = vpop.xlane.xlu0 %1272  ;;  %2130 = vmatmul.mubr.f32.gmra.mrb[62].mxu1 %v1640_v32  ;;  %v1465_v43 = vmul.f32 %v3069_v39, %v4122_v59 }
 0x479   : > { %3080 = vrcp.f32 %v1273_v52  ;;  %v1641_v20 = vmax.f32 %v1625_v0, 0.001  ;;  %v4527_v0 = vld [vmem:[#allocation26_spill] sm:$0xff] }
 0x47a   : > { %v3071_v2 = vpop.eup %3070  ;;  %v1481_v60 = vmax.f32 %v1465_v43, 0.001 }
 0x47b   : > { %v1593_v12 = vpop.xlane.xlu1 %1592  ;;  %v1785_v3 = vmul.f32 %v3071_v2, %v4128_v26  ;;  %v3073_v11 = vpop.eup %3072 }
 0x47c   : > { %3082 = vrcp.f32 %v1593_v12  ;;  %1989 = vmatprep.mubr.f32.mxu0 %v1481_v60  ;;  %v1433_v35 = vpop.xlane.xlu0 %1432  ;;  %v1306_v41 = vmul.f32 %v3073_v11, %v4521_v19  ;;  %v4528_v11 = vld [vmem:[#allocation14_spill] sm:$0xff]  ;;  %v4530_v19 = vld [vmem:[#allocation28_spill] sm:$0xff] }
 0x47d   : > { %3084 = vrcp.f32 %v1433_v35  ;;  %1990 = vmatmul.mubr.f32.gmra.mrb[70].mxu0 %v1321_v57  ;;  %v1801_v54 = vmax.f32 %v1785_v3, 0.001 }
 0x47e   : > { %v3075_v58 = vpop.eup %3074  ;;  %v1322_v63 = vmax.f32 %v1306_v41, 0.001 }
 0x47f   : > { %v3077_v44 = vpop.eup %3076  ;;  %2134 = vmatprep.mubr.f32.mxu1 %v1801_v54  ;;  %v1753_v59 = vpop.xlane.xlu1 %1752  ;;  %v1626_v9 = vmul.f32 %v3075_v58, %v4523_v48 }
 0x480   : > { %3086 = vrcp.f32 %v1753_v59  ;;  %v1275_v18 = vpop.xlane.xlu0 %1274  ;;  %2135 = vmatmul.mubr.f32.gmra.mrb[64].mxu1 %v1641_v20  ;;  %v1466_v14 = vmul.f32 %v3077_v44, %v4522_v31  ;;  %v4531_v31 = vld [vmem:[#allocation25_spill] sm:$0xff] }
 0x481   : > { %3088 = vrcp.f32 %v1275_v18  ;;  %v1642_v23 = vmax.f32 %v1626_v9, 0.001 }
 0x482   : > { %v3079_v26 = vpop.eup %3078  ;;  %v1482_v51 = vmax.f32 %v1466_v14, 0.001 }
 0x483   : > { %v1786_v7 = vmul.f32 %v3079_v26, %v4524_v27  ;;  %v3081_v61 = vpop.eup %3080 }
 0x484   : > { %1994 = vmatprep.mubr.f32.mxu0 %v1482_v51  ;;  %v1435_v55 = vpop.xlane.xlu0 %1434  ;;  %v1307_v28 = vmul.f32 %v3081_v61, %v4145_v62  ;;  %v4532_v51 = vld [vmem:[#allocation27_spill] sm:$0xff]  ;;  %v4533_v61 = vld [vmem:[#allocation13_spill] sm:$0xff] }
 0x485   : > { %3090 = vrcp.f32 %v1435_v55  ;;  %1995 = vmatmul.mubr.f32.gmra.mrb[72].mxu0 %v1322_v63  ;;  %v1802_v29 = vmax.f32 %v1786_v7, 0.001 }
 0x486   : > { %v3083_v33 = vpop.eup %3082  ;;  %v1323_v24 = vmax.f32 %v1307_v28, 0.001 }
 0x487   : > { %v3085_v25 = vpop.eup %3084  ;;  %2139 = vmatprep.mubr.f32.mxu1 %v1802_v29  ;;  %v1755_v5 = vpop.xlane.xlu1 %1754  ;;  %v1627_v15 = vmul.f32 %v3083_v33, %v4525_v37  ;;  %v4534_v33 = vld [vmem:[#allocation16_spill] sm:$0xff]  ;;  %v4536_v37 = vld [vmem:[#allocation43_spill] sm:$0xff] }
 0x488   : > { %3092 = vrcp.f32 %v1755_v5  ;;  %v1277_v40 = vpop.xlane.xlu0 %1276  ;;  %2140 = vmatmul.mubr.f32.gmra.mrb[66].mxu1 %v1642_v23  ;;  %v1467_v6 = vmul.f32 %v3085_v25, %v4154_v47 }
 0x489   : > { %3094 = vrcp.f32 %v1277_v40  ;;  %v1643_v47 = vmax.f32 %v1627_v15, 0.001  ;;  %v4535_v40 = vld [vmem:[#allocation15_spill] sm:$0xff] }
 0x48a   : > { %v3087_v10 = vpop.eup %3086  ;;  %v1483_v45 = vmax.f32 %v1467_v6, 0.001  ;;  %3096 = vrcp.f32 %v4210_v46 }
 0x48b   : > { %v1595_v36 = vpop.xlane.xlu1 %1594  ;;  %v1787_v42 = vmul.f32 %v3087_v10, %v4526_v13  ;;  %v3089_v38 = vpop.eup %3088 }
 0x48c   : > { %3098 = vrcp.f32 %v1595_v36  ;;  %1999 = vmatprep.mubr.f32.mxu0 %v1483_v45  ;;  %v1437_v62 = vpop.xlane.xlu0 %1436  ;;  %v1308_v56 = vmul.f32 %v3089_v38, %v4163_v34 }
 0x48d   : > { %3100 = vrcp.f32 %v1437_v62  ;;  %2000 = vmatmul.mubr.f32.gmra.mrb[74].mxu0 %v1323_v24  ;;  %v1803_v1 = vmax.f32 %v1787_v42, 0.001 }
 0x48e   : > { %3102 = vrcp.f32 %v4208_v17  ;;  %v1324_v21 = vmax.f32 %v1308_v56, 0.001 }
 0x48f   : > { %v3091_v16 = vpop.eup %3090  ;;  %2144 = vmatprep.mubr.f32.mxu1 %v1803_v1  ;;  %v1757_v50 = vpop.xlane.xlu1 %1756 }
 0x490   : > { %3104 = vrcp.f32 %v1757_v50  ;;  %v1729_v46 = vpop.xlane.xlu0 %1728  ;;  %2145 = vmatmul.mubr.f32.gmra.mrb[68].mxu1 %v1643_v47  ;;  %v1468_v49 = vmul.f32 %v3091_v16, %v4171_v8 }
 0x491   : > { %3106 = vrcp.f32 %v1729_v46 }
 0x492   : > { %v3093_v22 = vpop.eup %3092  ;;  %v1484_v32 = vmax.f32 %v1468_v49, 0.001 }
 0x493   : > { %v1597_v39 = vpop.xlane.xlu1 %1596  ;;  %v1788_v53 = vmul.f32 %v3093_v22, %v4176_v30  ;;  %v3095_v52 = vpop.eup %3094  ;;  %v4529_v30 = vld [vmem:[#allocation30_spill] sm:$0xff] }
 0x494   : > { %3108 = vrcp.f32 %v1597_v39  ;;  %2004 = vmatprep.mubr.f32.mxu0 %v1484_v32  ;;  %v1569_v17 = vpop.xlane.xlu0 %1568  ;;  %v3097_v43 = vpop.eup %3096  ;;  %v1309_v12 = vmul.f32 %v3095_v52, %v4527_v0 }
 0x495   : > { %3110 = vrcp.f32 %v1569_v17  ;;  %2005 = vmatmul.mubr.f32.gmra.mrb[76].mxu0 %v1324_v21  ;;  %v1804_v34 = vmax.f32 %v1788_v53, 0.001  ;;  %v1774_v54 = vmul.f32 %v3097_v43, %v4529_v30 }
 0x496   : > { %v3099_v2 = vpop.eup %3098  ;;  %v1325_v18 = vmax.f32 %v1309_v12, 0.001 }
 0x497   : > { %v3101_v60 = vpop.eup %3100  ;;  %2149 = vmatprep.mubr.f32.mxu1 %v1804_v34  ;;  %v1628_v8 = vmul.f32 %v3099_v2, %v4184_v4  ;;  %v1790_v26 = vmax.f32 %v1774_v54, 0.001 }
 0x498   : > { %v3103_v57 = vpop.eup %3102  ;;  %v1731_v3 = vpop.xlane.xlu0 %1730  ;;  %v1469_v35 = vmul.f32 %v3101_v60, %v4528_v11 }
 0x499   : > { %3112 = vrcp.f32 %v1731_v3  ;;  %v1644_v58 = vmax.f32 %v1628_v8, 0.001  ;;  %v1614_v41 = vmul.f32 %v3103_v57, %v4530_v19 }
 0x49a   : > { %v3105_v20 = vpop.eup %3104  ;;  %v1485_v44 = vmax.f32 %v1469_v35, 0.001 }
 0x49b   : > { %v3107_v59 = vpop.eup %3106  ;;  %2150 = vmatmul.mubr.f32.gmra.mrb[70].mxu1 %v1644_v58  ;;  %v1789_v14 = vmul.f32 %v3105_v20, %v4531_v31  ;;  %v1630_v7 = vmax.f32 %v1614_v41, 0.001 }
 0x49c   : > { %2009 = vmatprep.mubr.f32.mxu0 %v1485_v44  ;;  %v1571_v4 = vpop.xlane.xlu0 %1570  ;;  %v1775_v48 = vmul.f32 %v3107_v59, %v4532_v51 }
 0x49d   : > { %3114 = vrcp.f32 %v1571_v4  ;;  %2010 = vmatmul.mubr.f32.gmra.mrb[78].mxu0 %v1325_v18  ;;  %v1805_v9 = vmax.f32 %v1789_v14, 0.001 }
 0x49e   : > { %v3109_v63 = vpop.eup %3108  ;;  %2079 = vmatprep.mubr.f32.mxu0 %v1790_v26  ;;  %v1791_v29 = vmax.f32 %v1775_v48, 0.001 }
 0x49f   : > { %v3111_v27 = vpop.eup %3110  ;;  %2154 = vmatprep.mubr.f32.mxu1 %v1805_v9  ;;  %v1629_v55 = vmul.f32 %v3109_v63, %v4533_v61 }
 0x4a0   : > { %v1615_v23 = vmul.f32 %v3111_v27, %v4534_v33 }
 0x4a1   : > { %2080 = vmatmul.mubr.f32.vlgmr.msra.gmra.mrb[80].mxu0 %v1630_v7  ;;  %v1645_v25 = vmax.f32 %v1629_v55, 0.001 }
 0x4a2   : > { %2084 = vmatprep.mubr.f32.mxu0 %v1791_v29  ;;  %v1631_v5 = vmax.f32 %v1615_v23, 0.001 }
 0x4a3   : > { %v3113_v28 = vpop.eup %3112  ;;  %2155 = vmatmul.mubr.f32.gmra.mrb[72].mxu1 %v1645_v25 }
 0x4a4   : > { %v1776_v6 = vmul.f32 %v3113_v28, %v4535_v40 }
 0x4a5   : > { %2085 = vmatmul.mubr.f32.gmra.mrb[82].mxu0 %v1631_v5 }
 0x4a6   : > { %v1792_v10 = vmax.f32 %v1776_v6, 0.001 }
 0x4a7   : > { %v3115_v45 = vpop.eup %3114 }
 0x4a8   : > { %2089 = vmatprep.mubr.f32.mxu0 %v1792_v10  ;;  %v1616_v15 = vmul.f32 %v3115_v45, %v4536_v37 }
 0x4aa   : > { %v1632_v36 = vmax.f32 %v1616_v15, 0.001 }
 0x4ac   : > { %2090 = vmatmul.mubr.f32.gmra.mrb[84].mxu0 %v1632_v36 }
 0x4fc   : > { %v2393_v24 = vpop.f32.mrb[48].mxu0 }
 0x4fd   : > { %v2394_v13 = vpop.f32.mrb[49].mxu0 }
 0x4fe   : > { %v4293_v42 = vadd.f32 %v2394_v13, %v2393_v24 }
 0x504   : > { %v2396_v38 = vpop.f32.mrb[50].mxu0 }
 0x505   : > { %v2397_v62 = vpop.f32.mrb[51].mxu0 }
 0x506   : > { %v4295_v1 = vadd.f32 %v2397_v62, %v2396_v38 }
 0x50b   : > { %v2482_v47 = vpop.f32.mrb[48].mxu1 }
 0x50c   : > { %v2483_v16 = vpop.f32.mrb[49].mxu1 }
 0x50d   : > { %v2484_v50 = vadd.f32 %v2483_v16, %v2482_v47 }
 0x510   : > { %v2399_v56 = vpop.f32.mrb[52].mxu0 }
 0x511   : > { %v2400_v46 = vpop.f32.mrb[53].mxu0 }
 0x512   : > { %v4297_v49 = vadd.f32 %v2400_v46, %v2399_v56 }
 0x517   : > { %v2485_v22 = vpop.f32.mrb[50].mxu1 }
 0x518   : > { %v2402_v32 = vpop.f32.mrb[54].mxu0  ;;  %v2486_v39 = vpop.f32.mrb[51].mxu1 }
 0x519   : > { %v2403_v21 = vpop.f32.mrb[55].mxu0  ;;  %v2487_v53 = vadd.f32 %v2486_v39, %v2485_v22 }
 0x51a   : > { %v2404_v52 = vadd.f32 %v2403_v21, %v2402_v32 }
 0x51c   : > { %v2097_v17 = vadd.f32 %v2484_v50, %v2404_v52  ;;  %v2405_v43 = vpop.f32.mrb[56].mxu0 }
 0x51d   : > { %v2406_v34 = vpop.f32.mrb[57].mxu0 }
 0x51e   : > { %2163 = vst [vmem:[%s4302_s19 + $0x18] sm:$0xff] %v2097_v17  ;;  %v2407_v2 = vadd.f32 %v2406_v34, %v2405_v43 }
 0x520   : > { %v2102_v60 = vadd.f32 %v2487_v53, %v2407_v2  ;;  %v2408_v8 = vpop.f32.mrb[58].mxu0 }
 0x521   : > { %v2409_v0 = vpop.f32.mrb[59].mxu0 }
 0x522   : > { %2164 = vst [vmem:[%s4302_s19 + $0x20] sm:$0xff] %v2102_v60  ;;  %v2410_v12 = vadd.f32 %v2409_v0, %v2408_v8 }
 0x523   : > { %v2488_v57 = vpop.f32.mrb[52].mxu1 }
 0x524   : > { %v2489_v3 = vpop.f32.mrb[53].mxu1 }
 0x525   : > { %v2490_v11 = vadd.f32 %v2489_v3, %v2488_v57 }
 0x527   : > { %v2107_v35 = vadd.f32 %v2490_v11, %v2410_v12 }
 0x528   : > { %v2411_v30 = vpop.f32.mrb[60].mxu0 }
 0x529   : > { %2165 = vst [vmem:[%s4302_s19 + $0x28] sm:$0xff] %v2107_v35  ;;  %v2412_v54 = vpop.f32.mrb[61].mxu0 }
 0x52a   : > { %v2413_v58 = vadd.f32 %v2412_v54, %v2411_v30 }
 0x52b   : > { %v2491_v20 = vpop.f32.mrb[54].mxu1 }
 0x52c   : > { %v2492_v44 = vpop.f32.mrb[55].mxu1 }
 0x52d   : > { %v2493_v59 = vadd.f32 %v2492_v44, %v2491_v20 }
 0x52f   : > { %v2112_v19 = vadd.f32 %v2493_v59, %v2413_v58 }
 0x530   : > { %v2414_v41 = vpop.f32.mrb[62].mxu0 }
 0x531   : > { %2166 = vst [vmem:[%s4302_s19 + $0x30] sm:$0xff] %v2112_v19  ;;  %v2415_v18 = vpop.f32.mrb[63].mxu0 }
 0x532   : > { %v2416_v31 = vadd.f32 %v2415_v18, %v2414_v41 }
 0x533   : > { %v2494_v14 = vpop.f32.mrb[56].mxu1 }
 0x534   : > { %v2495_v4 = vpop.f32.mrb[57].mxu1 }
 0x535   : > { %v2496_v26 = vadd.f32 %v2495_v4, %v2494_v14 }
 0x537   : > { %v2117_v51 = vadd.f32 %v2496_v26, %v2416_v31 }
 0x538   : > { %v2417_v48 = vpop.f32.mrb[64].mxu0 }
 0x539   : > { %2167 = vst [vmem:[%s4302_s19 + $0x38] sm:$0xff] %v2117_v51  ;;  %v2418_v9 = vpop.f32.mrb[65].mxu0 }
 0x53a   : > { %v2419_v63 = vadd.f32 %v2418_v9, %v2417_v48 }
 0x53b   : > { %v2497_v27 = vpop.f32.mrb[58].mxu1 }
 0x53c   : > { %v2498_v7 = vpop.f32.mrb[59].mxu1 }
 0x53d   : > { %v2499_v61 = vadd.f32 %v2498_v7, %v2497_v27 }
 0x53f   : > { %v2122_v55 = vadd.f32 %v2499_v61, %v2419_v63 }
 0x540   : > { %v2420_v29 = vpop.f32.mrb[66].mxu0 }
 0x541   : > { %2168 = vst [vmem:[%s4302_s19 + $0x40] sm:$0xff] %v2122_v55  ;;  %v2421_v33 = vpop.f32.mrb[67].mxu0 }
 0x542   : > { %v2422_v23 = vadd.f32 %v2421_v33, %v2420_v29 }
 0x543   : > { %v2500_v25 = vpop.f32.mrb[60].mxu1 }
 0x544   : > { %v2501_v5 = vpop.f32.mrb[61].mxu1 }
 0x545   : > { %v2502_v28 = vadd.f32 %v2501_v5, %v2500_v25 }
 0x547   : > { %v2127_v40 = vadd.f32 %v2502_v28, %v2422_v23 }
 0x548   : > { %v2423_v6 = vpop.f32.mrb[68].mxu0 }
 0x549   : > { %2169 = vst [vmem:[%s4302_s19 + $0x48] sm:$0xff] %v2127_v40  ;;  %v2424_v10 = vpop.f32.mrb[69].mxu0 }
 0x54a   : > { %v2425_v45 = vadd.f32 %v2424_v10, %v2423_v6 }
 0x54b   : > { %v2503_v37 = vpop.f32.mrb[62].mxu1 }
 0x54c   : > { %v2504_v15 = vpop.f32.mrb[63].mxu1 }
 0x54d   : > { %v2505_v36 = vadd.f32 %v2504_v15, %v2503_v37 }
 0x54f   : > { %v2132_v24 = vadd.f32 %v2505_v36, %v2425_v45 }
 0x550   : > { %v2426_v13 = vpop.f32.mrb[70].mxu0 }
 0x551   : > { %2170 = vst [vmem:[%s4302_s19 + $0x50] sm:$0xff] %v2132_v24  ;;  %v2427_v38 = vpop.f32.mrb[71].mxu0 }
 0x552   : > { %v2428_v62 = vadd.f32 %v2427_v38, %v2426_v13 }
 0x553   : > { %v2506_v47 = vpop.f32.mrb[64].mxu1 }
 0x554   : > { %v2507_v16 = vpop.f32.mrb[65].mxu1 }
 0x555   : > { %v2508_v50 = vadd.f32 %v2507_v16, %v2506_v47 }
 0x557   : > { %v2137_v56 = vadd.f32 %v2508_v50, %v2428_v62 }
 0x558   : > { %v2429_v46 = vpop.f32.mrb[72].mxu0 }
 0x559   : > { %2171 = vst [vmem:[%s4302_s19 + $0x58] sm:$0xff] %v2137_v56  ;;  %v2430_v22 = vpop.f32.mrb[73].mxu0 }
 0x55a   : > { %v2431_v32 = vadd.f32 %v2430_v22, %v2429_v46 }
 0x55b   : > { %v2509_v39 = vpop.f32.mrb[66].mxu1 }
 0x55c   : > { %v2510_v21 = vpop.f32.mrb[67].mxu1 }
 0x55d   : > { %v2511_v53 = vadd.f32 %v2510_v21, %v2509_v39 }
 0x55f   : > { %v2142_v52 = vadd.f32 %v2511_v53, %v2431_v32 }
 0x560   : > { %v2432_v17 = vpop.f32.mrb[74].mxu0 }
 0x561   : > { %2172 = vst [vmem:[%s4302_s19 + $0x60] sm:$0xff] %v2142_v52  ;;  %v2433_v43 = vpop.f32.mrb[75].mxu0 }
 0x562   : > { %v2434_v34 = vadd.f32 %v2433_v43, %v2432_v17 }
 0x563   : > { %v2512_v2 = vpop.f32.mrb[68].mxu1 }
 0x564   : > { %v2513_v60 = vpop.f32.mrb[69].mxu1 }
 0x565   : > { %v2514_v8 = vadd.f32 %v2513_v60, %v2512_v2 }
 0x567   : > { %v2147_v0 = vadd.f32 %v2514_v8, %v2434_v34 }
 0x568   : > { %v2435_v12 = vpop.f32.mrb[76].mxu0 }
 0x569   : > { %2173 = vst [vmem:[%s4302_s19 + $0x68] sm:$0xff] %v2147_v0  ;;  %v2436_v57 = vpop.f32.mrb[77].mxu0 }
 0x56a   : > { %v2437_v3 = vadd.f32 %v2436_v57, %v2435_v12 }
 0x56e   : > { %v2515_v11 = vpop.f32.mrb[70].mxu1 }
 0x56f   : > { %v2516_v35 = vpop.f32.mrb[71].mxu1 }
 0x570   : > { %v2438_v30 = vpop.f32.mrb[78].mxu0  ;;  %v2517_v54 = vadd.f32 %v2516_v35, %v2515_v11 }
 0x571   : > { %v2439_v58 = vpop.f32.mrb[79].mxu0 }
 0x572   : > { %v2152_v20 = vadd.f32 %v2517_v54, %v2437_v3  ;;  %v2440_v44 = vadd.f32 %v2439_v58, %v2438_v30 }
 0x574   : > { %2174 = vst [vmem:[%s4302_s19 + $0x70] sm:$0xff] %v2152_v20  ;;  %v2473_v59 = vpop.f32.mrb[80].mxu0 }
 0x575   : > { %v2474_v19 = vpop.f32.mrb[81].mxu0 }
 0x576   : > { %v2475_v41 = vadd.f32 %v2474_v19, %v2473_v59  ;;  %v2518_v18 = vpop.f32.mrb[72].mxu1 }
 0x577   : > { %v2519_v31 = vpop.f32.mrb[73].mxu1 }
 0x578   : > { %v2082_v14 = vadd.f32 %v2475_v41, %v4293_v42  ;;  %v2476_v4 = vpop.f32.mrb[82].mxu0  ;;  %v2520_v26 = vadd.f32 %v2519_v31, %v2518_v18 }
 0x579   : > { %v2477_v51 = vpop.f32.mrb[83].mxu0 }
 0x57a   : > { %2160 = vst [vmem:[%s4302_s19] sm:$0xff] %v2082_v14  ;;  %v2157_v48 = vadd.f32 %v2520_v26, %v2440_v44  ;;  %v2478_v9 = vadd.f32 %v2477_v51, %v2476_v4 }
 0x57c   : > { %2175 = vst [vmem:[%s4302_s19 + $0x78] sm:$0xff] %v2157_v48  ;;  %v2087_v63 = vadd.f32 %v2478_v9, %v4295_v1 }
 0x57e   : > { %2161 = vst [vmem:[%s4302_s19 + $0x8] sm:$0xff] %v2087_v63 }
 0x57f   : > { %v2479_v27 = vpop.f32.mrb[84].mxu0 }
 0x580   : > { %v2480_v7 = vpop.f32.mrb[85].mxu0 }
 0x581   : > { %v2481_v61 = vadd.f32 %v2480_v7, %v2479_v27 }
 0x583   : > { %v2092_v42 = vadd.f32 %v2481_v61, %v4297_v49 }
 0x585   : > { %2162 = vst [vmem:[%s4302_s19 + $0x10] sm:$0xff] %v2092_v42 }
 0x586   : > { %3185 = shalt.err (!%p3182_p11)
}
 0x587   : > { %s3186_s26 = scalar_lea.hbm %s4326_s20, 2048  ;;  %s3190_s13 = scalar_lea.hbm %s4383_s8, 4096 }
 0x588   : > { %p3187_p13 = scmp.ne.s32.totalorder %s4326_s20, %s3186_s26  ;;  %p3191_p6 = scmp.lt.u32.totalorder %s4326_s20, %s4383_s8 }
 0x589   : > { %p3192_p9 = scmp.lt.u32.totalorder %s3190_s13, %s3186_s26  ;;  %p3194_p12 = scmp.lt.u32.totalorder %s3186_s26, %s4326_s20 }
 0x58a   : > { %p3188_p0 = pnand %p3187_p13, %p4537_p1 }
 0x58b   : > { %p3193_p10 = por %p3192_p9, %p3191_p6 }
 0x58c   : > { %p3189_p5 = pneg %p3188_p0 }
 0x58d   : > { %p3195_p2 = por %p3194_p12, %p3193_p10 }
 0x58f   : > { %p3196_p3 = pnand %p3195_p2, %p3189_p5 }
 0x591   : > { %3199 = shalt.err (!%p3196_p3)
}
 0x592   : > { %s3252_s29 = smov 128   ;;  %s3253_s21 = smov 8  }
 0x593   : > { %2801 = dma.vmem_to_hbm [thread:$0]  (%p4537_p1), %s4328_s14, 2048, %s4326_s20, %s4334_s22, %s3252_s29, %s3252_s29, %s3253_s21  }
 0x594 PF: > { %p2818_p4 = scmp.ge.s32.totalorder %s3242_s30, 2  ;;  %s2205_s23 = sand.u32 1, %s3230_s27  }
 0x595   : > { %p4538_p7 = scmp.ne.s32.totalorder %s4437_s16, 0  ;;  %s2206_s9 = scalar_lea.sflag [#allocation4], %s2205_s23 }
 0x597   : > { %p2811_p8 = pnand %p2818_p4, %p4538_p7 }
 0x599   : > { %3225 = dma.done.wait (!%p2811_p8), %s2206_s9, 2048  }
 0x59a   : > { %3227 = vsyncadd (!%p2811_p8), %s2206_s9, 4294965248  ;;  %s4539_s25 = sld [smem:[#allocation11_spill]]  ;;  %s4540_s29 = sld [smem:[#allocation12_spill]] }
 0x59b   : > { %p20_p11 = scmp.ge.s32.totalorder %s3324_s11, 4   ;;  %s4541_s27 = smov %s3234_s28 }
 0x59c   : > { %s4543_s30 = smov %s3324_s11 }
 0x59d   :  { %22 = sbr.rel (!%p20_p11) target bundleno = 5 (0x5), region = 96 }
 0x5a0   : > { %s4542_s28 = smov %s4539_s25 }
 0x5a4   :  { %2211 = vsyncpa [#allocation3], 1 }
 0x5a5   :  { %2213 = vsyncpa [#allocation3 + $0x1], 1 }
 0x5a6   :  { %2214 = vsyncpa [#allocation6], 1 }
 0x5a7   :  { %2215 = vsyncpa [#allocation4], 1 }
 0x5a8   :  { %2217 = vsyncpa [#allocation4 + $0x1], 1 }

</bundles_post_ra>
